<compile_context>
chip_gen: v6e
topology: v6e:2x2x1
jax: 0.10.0
libtpu: 0.0.40
codegen_flags: <defaults>
</compile_context>

<pallas_src>
import jax
import jax.numpy as jnp
from jax.experimental import pallas as pl
from jax.experimental.pallas import tpu as pltpu

HIDDEN = 768        # BERT hidden size (pooler / fc1 input)
FC1_DIM = 512
N_CLS = 6
N_CLS_PAD = 128     # pad classifier output dim to exactly one full lane tile
VOCAB = 1000        # synthetic vocab for the encoder stand-in


def _clf_head_kernel(x_ref, wp_ref, bp_ref, w1_ref, b1_ref, w2_ref, b2_ref,
                     out_ref):
    # x_ref: [Bm, 768] bf16 (masked-mean pooled tokens)
    # wp:    [768, 768] bf16   bp: [1, 768] f32    (BERT pooler)
    # w1:    [768, 512] bf16   b1: [1, 512] f32    (fc1)
    # w2:    [512, 128] bf16   b2: [1, 128] f32    (fc2, cols >= 6 are zero)
    x = x_ref[...]

    # Pooler dense + tanh -> cls_hs (f32 accumulate on MXU, tanh on EUP)
    cls_hs = jnp.tanh(
        jnp.dot(x, wp_ref[...], preferred_element_type=jnp.float32)
        + bp_ref[...])

    # fc1 + bias + ReLU
    h = jnp.dot(cls_hs.astype(jnp.bfloat16), w1_ref[...],
                preferred_element_type=jnp.float32) + b1_ref[...]
    h = jnp.maximum(h, 0.0)

    # dropout(p=0.1): identity at inference time.

    # fc2 (output dim padded 6 -> 128 with zero weights/bias)
    out_ref[...] = (
        jnp.dot(h.astype(jnp.bfloat16), w2_ref[...],
                preferred_element_type=jnp.float32) + b2_ref[...])


def init_params(key):
    ks = jax.random.split(key, 7)

    def unif(k, shape, fan_in):
        bound = 1.0 / jnp.sqrt(jnp.float32(fan_in))
        return jax.random.uniform(k, shape, jnp.float32, -bound, bound)

    # --- encoder stand-in (outside the kernel: embedding table only) ---
    emb = jax.random.normal(ks[0], (VOCAB, HIDDEN), jnp.float32) * 0.02

    # --- kernel-side weights: bf16 matmul operands, f32 biases ---
    wp = unif(ks[1], (HIDDEN, HIDDEN), HIDDEN).astype(jnp.bfloat16)    # pooler
    bp = unif(ks[2], (1, HIDDEN), HIDDEN)

    w1 = unif(ks[3], (HIDDEN, FC1_DIM), HIDDEN).astype(jnp.bfloat16)   # fc1
    b1 = unif(ks[4], (1, FC1_DIM), HIDDEN)

    w2_raw = unif(ks[5], (FC1_DIM, N_CLS), FC1_DIM)                    # fc2
    b2_raw = unif(ks[6], (1, N_CLS), FC1_DIM)
    w2 = (jnp.zeros((FC1_DIM, N_CLS_PAD), jnp.float32)
          .at[:, :N_CLS].set(w2_raw)).astype(jnp.bfloat16)
    b2 = jnp.zeros((1, N_CLS_PAD), jnp.float32).at[:, :N_CLS].set(b2_raw)

    return dict(emb=emb, wp=wp, bp=bp, w1=w1, b1=b1, w2=w2, b2=b2)


def _masked_mean_tokens(sent_id, mask, params):
    """Encoder stand-in (minus pooler): gather + masked mean, plain JAX.

    Emits bf16 directly so the convert fuses into the reduction epilogue and the
    kernel's input DMA is half-width.
    """
    emb = jnp.take(params["emb"], sent_id, axis=0)            # [B, S, H] f32
    m = mask.astype(jnp.float32)                              # [B, S]
    summed = jnp.sum(emb * m[:, :, None], axis=1)             # [B, H]
    count = jnp.maximum(jnp.sum(m, axis=1, keepdims=True), 1.0)
    return (summed / count).astype(jnp.bfloat16)              # [B, H] bf16


def _round_up(x, m):
    return ((x + m - 1) // m) * m


def _choose_batch_tiling(B):
    """Pick (Bm, Bp): tile rows and padded batch.

    * tiny batches: one tile (grid overhead irrelevant, padding minimal)
    * otherwise: >=2 grid steps, an even count so v7x's two TensorCores stay
      balanced, tile capped at 1024 rows, and Bm derived from ceil(B/n_tiles)
      so padding waste stays small for mid-size batches.
    """
    b16 = max(16, _round_up(B, 16))
    if b16 <= 64:
        return b16, b16
    n_tiles = max(2, pl.cdiv(b16, 1024))
    if n_tiles % 2:
        n_tiles += 1
    bm = _round_up(pl.cdiv(b16, n_tiles), 16)
    return bm, bm * n_tiles


def emotion_clf_forward(sent_id, mask, params):
    """sent_id: int32 [B, S], mask: {0,1} [B, S]  ->  logits f32 [B, 6]."""
    B, _ = sent_id.shape

    # Encoder stand-in (gather + masked mean) outside the kernel; bf16 output.
    pooled = _masked_mean_tokens(sent_id, mask, params)       # [B, 768] bf16

    Bm, Bp = _choose_batch_tiling(B)
    x = jnp.pad(pooled, ((0, Bp - B), (0, 0)))                # bf16, half-width pad

    out = pl.pallas_call(
        _clf_head_kernel,
        out_shape=jax.ShapeDtypeStruct((Bp, N_CLS_PAD), jnp.float32),
        grid_spec=pltpu.PrefetchScalarGridSpec(
            num_scalar_prefetch=0,
            grid=(Bp // Bm,),
            in_specs=[
                pl.BlockSpec((Bm, HIDDEN), lambda i: (i, 0)),          # x tile
                pl.BlockSpec((HIDDEN, HIDDEN), lambda i: (0, 0)),      # wp (resident)
                pl.BlockSpec((1, HIDDEN), lambda i: (0, 0)),           # bp (resident)
                pl.BlockSpec((HIDDEN, FC1_DIM), lambda i: (0, 0)),     # w1 (resident)
                pl.BlockSpec((1, FC1_DIM), lambda i: (0, 0)),          # b1 (resident)
                pl.BlockSpec((FC1_DIM, N_CLS_PAD), lambda i: (0, 0)),  # w2 (resident)
                pl.BlockSpec((1, N_CLS_PAD), lambda i: (0, 0)),        # b2 (resident)
            ],
            out_specs=pl.BlockSpec((Bm, N_CLS_PAD), lambda i: (i, 0)),
        ),
        compiler_params=pltpu.CompilerParams(
            dimension_semantics=("parallel",),          # shard batch across TCs (v7x)
            vmem_limit_bytes=32 * 1024 * 1024,          # ~16 MiB used at Bm=1024
        ),
    )(x, params["wp"], params["bp"], params["w1"], params["b1"],
      params["w2"], params["b2"])

    return out[:B, :N_CLS]


if __name__ == "__main__":
    key = jax.random.PRNGKey(0)
    k_param, k_ids = jax.random.split(key)

    params = init_params(k_param)

    B, S = 2, 8
    sent_id = jax.random.randint(k_ids, (B, S), 0, VOCAB, dtype=jnp.int32)
    lengths = jnp.array([6, 4], dtype=jnp.int32)
    mask = (jnp.arange(S)[None, :] < lengths[:, None]).astype(jnp.int32)

    logits = jax.jit(emotion_clf_forward)(sent_id, mask, params)
    logits = jax.block_until_ready(logits)
    assert logits.shape == (B, N_CLS)
    assert jnp.all(jnp.isfinite(logits))
    print("KERNEL_OK")
</pallas_src>

<mosaic_0001>
module attributes {stable_mosaic.version = 11 : i64} {
  func.func @_clf_head_kernel(%arg0: i32, %arg1: memref<16x768xbf16, #tpu.memory_space<vmem>>, %arg2: memref<768x768xbf16, #tpu.memory_space<vmem>>, %arg3: memref<1x768xf32, #tpu.memory_space<vmem>>, %arg4: memref<768x512xbf16, #tpu.memory_space<vmem>>, %arg5: memref<1x512xf32, #tpu.memory_space<vmem>>, %arg6: memref<512x128xbf16, #tpu.memory_space<vmem>>, %arg7: memref<1x128xf32, #tpu.memory_space<vmem>>, %arg8: memref<16x128xf32, #tpu.memory_space<vmem>>) attributes {dimension_semantics = [#tpu.dimension_semantics<parallel>], iteration_bounds = array<i64: 1>, scalar_prefetch = 0 : i64, scratch_operands = 0 : i64, tpu.core_type = #tpu.core_type<tc>, window_params = [{transform_indices = @transform_0, window_bounds = array<i64: 16, 768>}, {pipeline_mode = #tpu.pipeline_mode<synchronous>, transform_indices = @transform_1, window_bounds = array<i64: 768, 768>}, {pipeline_mode = #tpu.pipeline_mode<synchronous>, transform_indices = @transform_2, window_bounds = array<i64: 1, 768>}, {pipeline_mode = #tpu.pipeline_mode<synchronous>, transform_indices = @transform_3, window_bounds = array<i64: 768, 512>}, {pipeline_mode = #tpu.pipeline_mode<synchronous>, transform_indices = @transform_4, window_bounds = array<i64: 1, 512>}, {pipeline_mode = #tpu.pipeline_mode<synchronous>, transform_indices = @transform_5, window_bounds = array<i64: 512, 128>}, {pipeline_mode = #tpu.pipeline_mode<synchronous>, transform_indices = @transform_6, window_bounds = array<i64: 1, 128>}, {transform_indices = @transform_7, window_bounds = array<i64: 16, 128>}]} {
    %c0 = arith.constant 0 : index
    %c0_0 = arith.constant 0 : index
    %0 = vector.load %arg1[%c0, %c0_0] : memref<16x768xbf16, #tpu.memory_space<vmem>>, vector<16x768xbf16>
    %c0_1 = arith.constant 0 : index
    %c0_2 = arith.constant 0 : index
    %1 = vector.load %arg2[%c0_1, %c0_2] : memref<768x768xbf16, #tpu.memory_space<vmem>>, vector<768x768xbf16>
    %cst = arith.constant dense<0.000000e+00> : vector<16x768xf32>
    %2 = tpu.matmul %0, %1, %cst {dimension_numbers = #tpu.dot_dimension_numbers<[1], [0], [0], [1], [0, 0, 1, 1], [], []>} : vector<16x768xbf16>, vector<768x768xbf16>, vector<16x768xf32> -> vector<16x768xf32>
    %c0_3 = arith.constant 0 : index
    %c0_4 = arith.constant 0 : index
    %3 = vector.load %arg3[%c0_3, %c0_4] : memref<1x768xf32, #tpu.memory_space<vmem>>, vector<1x768xf32>
    %4 = vector.broadcast %3 : vector<1x768xf32> to vector<16x768xf32>
    %5 = arith.addf %2, %4 : vector<16x768xf32>
    %6 = math.tanh %5 : vector<16x768xf32>
    %7 = arith.truncf %6 : vector<16x768xf32> to vector<16x768xbf16>
    %c0_5 = arith.constant 0 : index
    %c0_6 = arith.constant 0 : index
    %8 = vector.load %arg4[%c0_5, %c0_6] : memref<768x512xbf16, #tpu.memory_space<vmem>>, vector<768x512xbf16>
    %cst_7 = arith.constant dense<0.000000e+00> : vector<16x512xf32>
    %9 = tpu.matmul %7, %8, %cst_7 {dimension_numbers = #tpu.dot_dimension_numbers<[1], [0], [0], [1], [0, 0, 1, 1], [], []>} : vector<16x768xbf16>, vector<768x512xbf16>, vector<16x512xf32> -> vector<16x512xf32>
    %c0_8 = arith.constant 0 : index
    %c0_9 = arith.constant 0 : index
    %10 = vector.load %arg5[%c0_8, %c0_9] : memref<1x512xf32, #tpu.memory_space<vmem>>, vector<1x512xf32>
    %11 = vector.broadcast %10 : vector<1x512xf32> to vector<16x512xf32>
    %12 = arith.addf %9, %11 : vector<16x512xf32>
    %cst_10 = arith.constant 0.000000e+00 : f32
    %13 = vector.broadcast %cst_10 : f32 to vector<16x512xf32>
    %14 = arith.maximumf %12, %13 : vector<16x512xf32>
    %15 = arith.truncf %14 : vector<16x512xf32> to vector<16x512xbf16>
    %c0_11 = arith.constant 0 : index
    %c0_12 = arith.constant 0 : index
    %16 = vector.load %arg6[%c0_11, %c0_12] : memref<512x128xbf16, #tpu.memory_space<vmem>>, vector<512x128xbf16>
    %cst_13 = arith.constant dense<0.000000e+00> : vector<16x128xf32>
    %17 = tpu.matmul %15, %16, %cst_13 {dimension_numbers = #tpu.dot_dimension_numbers<[1], [0], [0], [1], [0, 0, 1, 1], [], []>} : vector<16x512xbf16>, vector<512x128xbf16>, vector<16x128xf32> -> vector<16x128xf32>
    %c0_14 = arith.constant 0 : index
    %c0_15 = arith.constant 0 : index
    %18 = vector.load %arg7[%c0_14, %c0_15] : memref<1x128xf32, #tpu.memory_space<vmem>>, vector<1x128xf32>
    %19 = vector.broadcast %18 : vector<1x128xf32> to vector<16x128xf32>
    %20 = arith.addf %17, %19 : vector<16x128xf32>
    %c0_16 = arith.constant 0 : index
    %c0_17 = arith.constant 0 : index
    %21 = vector.load %arg8[%c0_16, %c0_17] : memref<16x128xf32, #tpu.memory_space<vmem>>, vector<16x128xf32>
    tpu.vector_store %arg8[%c0_16, %c0_17], %20 {strides = array<i32>} : memref<16x128xf32, #tpu.memory_space<vmem>>, vector<16x128xf32>,
    return
  }
  func.func @transform_0(%arg0: i32) -> (i32, i32) {
    %c0_i32 = arith.constant 0 : i32
    %c0_i32_0 = arith.constant 0 : i32
    return %arg0, %c0_i32 : i32, i32
  }
  func.func @transform_1(%arg0: i32) -> (i32, i32) {
    %c0_i32 = arith.constant 0 : i32
    %c0_i32_0 = arith.constant 0 : i32
    %c0_i32_1 = arith.constant 0 : i32
    return %c0_i32, %c0_i32_0 : i32, i32
  }
  func.func @transform_2(%arg0: i32) -> (i32, i32) {
    %c0_i32 = arith.constant 0 : i32
    %c0_i32_0 = arith.constant 0 : i32
    %c0_i32_1 = arith.constant 0 : i32
    return %c0_i32, %c0_i32_0 : i32, i32
  }
  func.func @transform_3(%arg0: i32) -> (i32, i32) {
    %c0_i32 = arith.constant 0 : i32
    %c0_i32_0 = arith.constant 0 : i32
    %c0_i32_1 = arith.constant 0 : i32
    return %c0_i32, %c0_i32_0 : i32, i32
  }
  func.func @transform_4(%arg0: i32) -> (i32, i32) {
    %c0_i32 = arith.constant 0 : i32
    %c0_i32_0 = arith.constant 0 : i32
    %c0_i32_1 = arith.constant 0 : i32
    return %c0_i32, %c0_i32_0 : i32, i32
  }
  func.func @transform_5(%arg0: i32) -> (i32, i32) {
    %c0_i32 = arith.constant 0 : i32
    %c0_i32_0 = arith.constant 0 : i32
    %c0_i32_1 = arith.constant 0 : i32
    return %c0_i32, %c0_i32_0 : i32, i32
  }
  func.func @transform_6(%arg0: i32) -> (i32, i32) {
    %c0_i32 = arith.constant 0 : i32
    %c0_i32_0 = arith.constant 0 : i32
    %c0_i32_1 = arith.constant 0 : i32
    return %c0_i32, %c0_i32_0 : i32, i32
  }
  func.func @transform_7(%arg0: i32) -> (i32, i32) {
    %c0_i32 = arith.constant 0 : i32
    %c0_i32_0 = arith.constant 0 : i32
    return %arg0, %c0_i32 : i32, i32
  }
}

</mosaic_0001>

<bundles_post_ra>
// kernel: emotion_clf_forward.1
= control target key start
LH: loop header
LB: loop body
LE: loop exit
PB: predicated region body
PF: predicated region fallthrough
CT: control target
= control target key end

     0   :  { %12 = vsyncpa [#allocation3], 0  ;;  %s5783_s0 = inlined_call_operand.vmem [shape: bf16[16,768], index: 0, kind: input, shape index: {}]   ;;  %s5784_s1 = inlined_call_operand.hbm [shape: bf16[768,768], index: 1, kind: input, shape index: {}]   ;;  %s5785_s2 = inlined_call_operand.hbm [shape: f32[1,768], index: 2, kind: input, shape index: {}]   ;;  %s5786_s3 = inlined_call_operand.hbm [shape: bf16[768,512], index: 3, kind: input, shape index: {}]   ;;  %s5787_s4 = inlined_call_operand.hbm [shape: f32[1,512], index: 4, kind: input, shape index: {}]   ;;  %s5788_s5 = inlined_call_operand.hbm [shape: bf16[512,128], index: 5, kind: input, shape index: {}]   ;;  %s5789_s6 = inlined_call_operand.hbm [shape: f32[1,128], index: 6, kind: input, shape index: {}]   ;;  %s5790_s7 = inlined_call_operand.vmem [shape: f32[16,128], index: 7, kind: output, shape index: {}]  }
   0x1   :  { %13 = vsyncpa [#allocation5], 0 }
   0x2   :  { %14 = vsyncpa [#allocation8], 0 }
   0x3   :  { %15 = vsyncpa [#allocation11], 0  ;;  %s5597_s24 = smov [#allocation4]   ;;  %s5598_s26 = smov [#allocation7]  }
   0x4   :  { %s36_s25 = sshll.u32 %s5597_s24, 4  ;;  %s58_s27 = sshll.u32 %s5598_s26, 4  ;;  %s37_s25 = int_to_ptr.vmem [resolvable:$true] %s36_s25  ;;  %s59_s27 = int_to_ptr.vmem [resolvable:$true] %s58_s27 }
   0x5   :  { %s5477_s28 = scalar_lea.vmem %s37_s25, 96  ;;  %p5482_p1 = scmp.lt.s32.totalorder %s37_s25, %s37_s25 }
   0x6   :  { %p5478_p0 = scmp.ne.s32.totalorder %s37_s25, %s5477_s28  ;;  %p5483_p2 = scmp.lt.s32.totalorder %s5477_s28, %s5477_s28 }
   0x8   :  { %p5484_p3 = por %p5483_p2, %p5482_p1 }
   0xa   :  { %p5485_p4 = pnand %p5484_p3, %p5478_p0 }
   0xc   :  { %5488 = shalt.err (!%p5485_p4)
}
   0xd   :  { %39 = dma.hbm_to_vmem [thread:$0]  %s5785_s2, 96, %s37_s25, [#allocation5]  }
   0xe   :  { %s5497_s8 = scalar_lea.vmem %s59_s27, 64  ;;  %p5502_p6 = scmp.lt.s32.totalorder %s59_s27, %s59_s27 }
   0xf   :  { %p5498_p5 = scmp.ne.s32.totalorder %s59_s27, %s5497_s8  ;;  %p5503_p7 = scmp.lt.s32.totalorder %s5497_s8, %s5497_s8 }
  0x11   :  { %p5504_p8 = por %p5503_p7, %p5502_p6 }
  0x13   :  { %p5505_p9 = pnand %p5504_p8, %p5498_p5 }
  0x15   :  { %5508 = shalt.err (!%p5505_p9)
}
  0x16   :  { %61 = dma.hbm_to_vmem [thread:$0]  %s5787_s4, 64, %s59_s27, [#allocation8]  }
  0x17   :  { %s5599_s11 = smov [#allocation2]  }
  0x18   :  { %s23_s12 = sshll.u32 %s5599_s11, 4  ;;  %s24_s12 = int_to_ptr.vmem [resolvable:$true] %s23_s12 }
  0x19   :  { %s5517_s13 = scalar_lea.vmem %s24_s12, 36864  ;;  %p5522_p11 = scmp.lt.s32.totalorder %s24_s12, %s24_s12 }
  0x1a   :  { %p5518_p10 = scmp.ne.s32.totalorder %s24_s12, %s5517_s13  ;;  %p5523_p12 = scmp.lt.s32.totalorder %s5517_s13, %s5517_s13 }
  0x1c   :  { %p5524_p13 = por %p5523_p12, %p5522_p11 }
  0x1e   :  { %p5525_p0 = pnand %p5524_p13, %p5518_p10 }
  0x20   :  { %5528 = shalt.err (!%p5525_p0)
}
  0x21   :  { %s5600_s2 = smov 384   ;;  %s5601_s14 = smov 24  }
  0x22   :  { %29 = dma.hbm_to_vmem [thread:$0]  %s5784_s1, 36864, %s24_s12, [#allocation3], %s5600_s2, %s5600_s2, %s5601_s14  }
  0x23   :  { %s5602_s17 = smov [#allocation6]  }
  0x24   :  { %s45_s18 = sshll.u32 %s5602_s17, 4  ;;  %s46_s18 = int_to_ptr.vmem [resolvable:$true] %s45_s18 }
  0x25   :  { %s5537_s4 = scalar_lea.vmem %s46_s18, 24576  ;;  %p5542_p2 = scmp.lt.s32.totalorder %s46_s18, %s46_s18 }
  0x26   :  { %p5538_p1 = scmp.ne.s32.totalorder %s46_s18, %s5537_s4  ;;  %p5543_p3 = scmp.lt.s32.totalorder %s5537_s4, %s5537_s4 }
  0x28   :  { %p5544_p4 = por %p5543_p3, %p5542_p2 }
  0x2a   :  { %p5545_p5 = pnand %p5544_p4, %p5538_p1 }
  0x2c   :  { %5548 = shalt.err (!%p5545_p5)
}
  0x2d   :  { %s5603_s19 = smov 256   ;;  %s5604_s20 = smov 16  }
  0x2e   :  { %51 = dma.hbm_to_vmem [thread:$0]  %s5786_s3, 24576, %s46_s18, [#allocation5], %s5603_s19, %s5603_s19, %s5604_s20  }
  0x2f   :  { %s5605_s23 = smov [#allocation9]  }
  0x30   :  { %s67_s24 = sshll.u32 %s5605_s23, 4  ;;  %s68_s24 = int_to_ptr.vmem [resolvable:$true] %s67_s24 }
  0x31   :  { %s5557_s1 = scalar_lea.vmem %s68_s24, 4096  ;;  %p5562_p7 = scmp.lt.s32.totalorder %s68_s24, %s68_s24 }
  0x32   :  { %p5558_p6 = scmp.ne.s32.totalorder %s68_s24, %s5557_s1  ;;  %p5563_p8 = scmp.lt.s32.totalorder %s5557_s1, %s5557_s1 }
  0x34   :  { %p5564_p9 = por %p5563_p8, %p5562_p7 }
  0x36   :  { %p5565_p10 = pnand %p5564_p9, %p5558_p6 }
  0x38   :  { %5568 = shalt.err (!%p5565_p10)
}
  0x39   :  { %s5606_s25 = smov 64   ;;  %s5607_s26 = smov 4  }
  0x3a   :  { %73 = dma.hbm_to_vmem [thread:$0]  %s5788_s5, 4096, %s68_s24, [#allocation8], %s5606_s25, %s5606_s25, %s5607_s26  }
  0x3b   :  { %s5608_s29 = smov [#allocation10]  }
  0x3c   :  { %s80_s30 = sshll.u32 %s5608_s29, 4  ;;  %s81_s30 = int_to_ptr.vmem [resolvable:$true] %s80_s30 }
  0x3d   :  { %s5577_s3 = scalar_lea.vmem %s81_s30, 16  ;;  %s5581_s8 = scalar_lea.vmem %s81_s30, 32 }
  0x3e   :  { %p5578_p11 = scmp.ne.s32.totalorder %s81_s30, %s5577_s3  ;;  %p5582_p12 = scmp.lt.s32.totalorder %s81_s30, %s81_s30 }
  0x3f   :  { %p5583_p13 = scmp.lt.s32.totalorder %s5581_s8, %s5577_s3 }
  0x41   :  { %p5584_p0 = por %p5583_p13, %p5582_p12 }
  0x43   :  { %p5585_p1 = pnand %p5584_p0, %p5578_p11 }
  0x45   :  { %5588 = shalt.err (!%p5585_p1)
}
  0x46   :  { %83 = dma.hbm_to_vmem [thread:$0]  %s5789_s6, 16, %s81_s30, [#allocation11]  }
  0x47   :  { %5589 = dma.done.wait [#allocation3], 36864  }
  0x48   :  { %5590 = vsyncadd [#allocation3], 4294930432 }
  0x49   :  { %5591 = dma.done.wait [#allocation5], 24672  }
  0x4a   :  { %5592 = vsyncadd [#allocation5], 4294942624 }
  0x4b   :  { %5593 = dma.done.wait [#allocation8], 4160  }
  0x4c   :  { %5594 = vsyncadd [#allocation8], 4294963136 }
  0x4d   :  { %5595 = dma.done.wait [#allocation11], 16  }
  0x4e   :  { %5596 = vsyncadd [#allocation11], 4294967280  ;;  %v4678_v0 = vld [vmem:[#allocation2 + $0x154] ss:$24 sps:$4 sm:$0xff]   ;;  %v4680_v1 = vld [vmem:[#allocation2 + $0x150] ss:$24 sps:$4 sm:$0xff]  }
  0x4f   :  { %1899 = vmatprep.subr.bf16.mxu0 %v4678_v0  ;;  %v4681_v2 = vld [vmem:[#allocation2 + $0x454] ss:$24 sps:$4 sm:$0xff]   ;;  %v4683_v3 = vld [vmem:[#allocation2 + $0x450] ss:$24 sps:$4 sm:$0xff]   ;;  %v4684_v4 = vld [vmem:[#allocation2 + $0x124] ss:$24 sps:$4 sm:$0xff]  }
  0x50   :  { %1900 = vmatpush1.bf16.msra.mxu0 %v4680_v1  ;;  %v4686_v5 = vld [vmem:[#allocation2 + $0x120] ss:$24 sps:$4 sm:$0xff]   ;;  %1942 = vmatprep.subr.bf16.mxu1 %v4681_v2  ;;  %v4687_v6 = vld [vmem:[#allocation2 + $0x424] ss:$24 sps:$4 sm:$0xff]   ;;  %v4690_v8 = vld [vmem:[#allocation2 + $0xf4] ss:$24 sps:$4 sm:$0xff]  }
  0x51   :  { %1943 = vmatpush1.bf16.msra.mxu1 %v4683_v3  ;;  %1901 = vmatprep.subr.bf16.mxu0 %v4684_v4  ;;  %v4689_v7 = vld [vmem:[#allocation2 + $0x420] ss:$24 sps:$4 sm:$0xff]   ;;  %v4692_v9 = vld [vmem:[#allocation2 + $0xf0] ss:$24 sps:$4 sm:$0xff]   ;;  %v4693_v10 = vld [vmem:[#allocation2 + $0x3f4] ss:$24 sps:$4 sm:$0xff]  }
  0x52   :  { %1944 = vmatprep.subr.bf16.mxu1 %v4687_v6  ;;  %v4696_v11 = vld [vmem:[#allocation2 + $0xc4] ss:$24 sps:$4 sm:$0xff]   ;;  %v4695_v12 = vld [vmem:[#allocation2 + $0x3f0] ss:$24 sps:$4 sm:$0xff]   ;;  %v4698_v14 = vld [vmem:[#allocation2 + $0xc0] ss:$24 sps:$4 sm:$0xff]  }
  0x53   :  { %v4699_v13 = vld [vmem:[#allocation2 + $0x3c4] ss:$24 sps:$4 sm:$0xff]   ;;  %v4702_v15 = vld [vmem:[#allocation2 + $0x94] ss:$24 sps:$4 sm:$0xff]   ;;  %v4701_v16 = vld [vmem:[#allocation2 + $0x3c0] ss:$24 sps:$4 sm:$0xff]  }
  0x54   :  { %1902 = vmatpush1.bf16.msra.mxu0 %v4686_v5  ;;  %v4705_v17 = vld [vmem:[#allocation2 + $0x394] ss:$24 sps:$4 sm:$0xff]   ;;  %v4704_v18 = vld [vmem:[#allocation2 + $0x90] ss:$24 sps:$4 sm:$0xff]   ;;  %v4708_v19 = vld [vmem:[#allocation2 + $0x64] ss:$24 sps:$4 sm:$0xff]  }
  0x55   :  { %1903 = vmatprep.subr.bf16.mxu0 %v4690_v8  ;;  %1945 = vmatpush1.bf16.msra.mxu1 %v4689_v7  ;;  %v4707_v20 = vld [vmem:[#allocation2 + $0x390] ss:$24 sps:$4 sm:$0xff]   ;;  %v4711_v21 = vld [vmem:[#allocation2 + $0x364] ss:$24 sps:$4 sm:$0xff]   ;;  %v4710_v22 = vld [vmem:[#allocation2 + $0x60] ss:$24 sps:$4 sm:$0xff]  }
  0x56   :  { %1946 = vmatprep.subr.bf16.mxu1 %v4693_v10  ;;  %v4714_v23 = vld [vmem:[#allocation2 + $0x34] ss:$24 sps:$4 sm:$0xff]   ;;  %v4713_v24 = vld [vmem:[#allocation2 + $0x360] ss:$24 sps:$4 sm:$0xff]   ;;  %v4716_v26 = vld [vmem:[#allocation2 + $0x30] ss:$24 sps:$4 sm:$0xff]  }
  0x57   :  { %v4717_v25 = vld [vmem:[#allocation2 + $0x334] ss:$24 sps:$4 sm:$0xff]   ;;  %v4720_v27 = vld [vmem:[#allocation2 + $0x4] ss:$24 sps:$4 sm:$0xff]   ;;  %v4719_v28 = vld [vmem:[#allocation2 + $0x330] ss:$24 sps:$4 sm:$0xff]  }
  0x58   :  { %1904 = vmatpush1.bf16.msra.mxu0 %v4692_v9  ;;  %v4723_v29 = vld [vmem:[#allocation2 + $0x304] ss:$24 sps:$4 sm:$0xff]   ;;  %v4722_v30 = vld [vmem:[#allocation2] ss:$24 sps:$4 sm:$0xff]   ;;  %v4726_v31 = vld [vmem:[#allocation2 + $0x2d4] ss:$24 sps:$4 sm:$0xff]  }
  0x59   :  { %1905 = vmatprep.subr.bf16.mxu0 %v4696_v11  ;;  %1947 = vmatpush1.bf16.msra.mxu1 %v4695_v12  ;;  %v4725_v32 = vld [vmem:[#allocation2 + $0x300] ss:$24 sps:$4 sm:$0xff]   ;;  %v4729_v33 = vld [vmem:[#allocation2 + $0x5d4] ss:$24 sps:$4 sm:$0xff]   ;;  %v4728_v34 = vld [vmem:[#allocation2 + $0x2d0] ss:$24 sps:$4 sm:$0xff]  }
  0x5a   :  { %1948 = vmatprep.subr.bf16.mxu1 %v4699_v13  ;;  %v4732_v35 = vld [vmem:[#allocation2 + $0x2a4] ss:$24 sps:$4 sm:$0xff]   ;;  %v4731_v36 = vld [vmem:[#allocation2 + $0x5d0] ss:$24 sps:$4 sm:$0xff]   ;;  %v4734_v38 = vld [vmem:[#allocation2 + $0x2a0] ss:$24 sps:$4 sm:$0xff]  }
  0x5b   :  { %v4735_v37 = vld [vmem:[#allocation2 + $0x5a4] ss:$24 sps:$4 sm:$0xff]   ;;  %v4738_v39 = vld [vmem:[#allocation2 + $0x274] ss:$24 sps:$4 sm:$0xff]   ;;  %v4737_v40 = vld [vmem:[#allocation2 + $0x5a0] ss:$24 sps:$4 sm:$0xff]  }
  0x5c   :  { %1906 = vmatpush1.bf16.msra.mxu0 %v4698_v14  ;;  %v4741_v41 = vld [vmem:[#allocation2 + $0x574] ss:$24 sps:$4 sm:$0xff]   ;;  %v4740_v42 = vld [vmem:[#allocation2 + $0x270] ss:$24 sps:$4 sm:$0xff]   ;;  %v4744_v43 = vld [vmem:[#allocation2 + $0x244] ss:$24 sps:$4 sm:$0xff]  }
  0x5d   :  { %1907 = vmatprep.subr.bf16.mxu0 %v4702_v15  ;;  %1949 = vmatpush1.bf16.msra.mxu1 %v4701_v16  ;;  %v4743_v44 = vld [vmem:[#allocation2 + $0x570] ss:$24 sps:$4 sm:$0xff]   ;;  %v4747_v45 = vld [vmem:[#allocation2 + $0x544] ss:$24 sps:$4 sm:$0xff]   ;;  %v4746_v46 = vld [vmem:[#allocation2 + $0x240] ss:$24 sps:$4 sm:$0xff]  }
  0x5e   :  { %1950 = vmatprep.subr.bf16.mxu1 %v4705_v17  ;;  %v4773_v47 = vld [vmem:[%s5783_s0 + $0x4] ss:$24 sps:$4 sm:$0xff]   ;;  %v4750_v48 = vld [vmem:[#allocation2 + $0x214] ss:$24 sps:$4 sm:$0xff]   ;;  %v4749_v49 = vld [vmem:[#allocation2 + $0x540] ss:$24 sps:$4 sm:$0xff]  }
  0x5f   :  { %1931 = vmatprep.mubr.bf16.mxu0 %v4773_v47  ;;  %v4753_v50 = vld [vmem:[#allocation2 + $0x514] ss:$24 sps:$4 sm:$0xff]   ;;  %v4752_v52 = vld [vmem:[#allocation2 + $0x210] ss:$24 sps:$4 sm:$0xff]   ;;  %v4756_v53 = vld [vmem:[#allocation2 + $0x1e4] ss:$24 sps:$4 sm:$0xff]  }
  0x60   :  { %1908 = vmatpush1.bf16.msra.mxu0 %v4704_v18  ;;  %v5673_v51 = vld [vmem:[%s5783_s0 + $0xc] ss:$24 sps:$4 sm:$0xff]   ;;  %v4755_v54 = vld [vmem:[#allocation2 + $0x510] ss:$24 sps:$4 sm:$0xff]   ;;  %v4758_v56 = vld [vmem:[#allocation2 + $0x1e0] ss:$24 sps:$4 sm:$0xff]  }
  0x61   :  { %1909 = vmatprep.subr.bf16.mxu0 %v4708_v19  ;;  %1951 = vmatpush1.bf16.msra.mxu1 %v4707_v20  ;;  %v4759_v55 = vld [vmem:[#allocation2 + $0x4e4] ss:$24 sps:$4 sm:$0xff]   ;;  %v4762_v57 = vld [vmem:[#allocation2 + $0x1b4] ss:$24 sps:$4 sm:$0xff]   ;;  %v4761_v58 = vld [vmem:[#allocation2 + $0x4e0] ss:$24 sps:$4 sm:$0xff]  }
  0x62   :  { %1952 = vmatprep.subr.bf16.mxu1 %v4711_v21  ;;  %1974 = vmatprep.mubr.bf16.mxu1 %v5673_v51  ;;  %v4765_v59 = vld [vmem:[#allocation2 + $0x4b4] ss:$24 sps:$4 sm:$0xff]   ;;  %v4764_v60 = vld [vmem:[#allocation2 + $0x1b0] ss:$24 sps:$4 sm:$0xff]   ;;  %v4768_v61 = vld [vmem:[#allocation2 + $0x184] ss:$24 sps:$4 sm:$0xff]  }
  0x63   :  { %v4767_v62 = vld [vmem:[#allocation2 + $0x4b0] ss:$24 sps:$4 sm:$0xff]   ;;  %v4771_v63 = vld [vmem:[#allocation2 + $0x484] ss:$24 sps:$4 sm:$0xff]   ;;  %v4770_v0 = vld [vmem:[#allocation2 + $0x180] ss:$24 sps:$4 sm:$0xff]  }
  0x64   :  { %1910 = vmatpush1.bf16.msra.mxu0 %v4710_v22  ;;  %v4779_v1 = vld [vmem:[#allocation2 + $0x754] ss:$24 sps:$4 sm:$0xff]   ;;  %v4775_v2 = vld [vmem:[#allocation2 + $0x480] ss:$24 sps:$4 sm:$0xff]   ;;  %v4777_v5 = vld [vmem:[#allocation2 + $0x750] ss:$24 sps:$4 sm:$0xff]  }
  0x65   :  { %1911 = vmatprep.subr.bf16.mxu0 %v4714_v23  ;;  %1953 = vmatpush1.bf16.msra.mxu1 %v4713_v24  ;;  %v5679_v3 = vld [vmem:[%s5783_s0] ss:$24 sps:$4 sm:$0xff]   ;;  %v4785_v4 = vld [vmem:[#allocation2 + $0x15c] ss:$24 sps:$4 sm:$0xff]   ;;  %v4791_v9 = vld [vmem:[#allocation2 + $0x12c] ss:$24 sps:$4 sm:$0xff]  }
  0x66   :  { %1954 = vmatprep.subr.bf16.mxu1 %v4717_v25  ;;  %v5684_v6 = vld [vmem:[%s5783_s0 + $0x8] ss:$24 sps:$4 sm:$0xff]   ;;  %v4788_v7 = vld [vmem:[#allocation2 + $0x724] ss:$24 sps:$4 sm:$0xff]   ;;  %v4783_v8 = vld [vmem:[#allocation2 + $0x158] ss:$24 sps:$4 sm:$0xff]  }
  0x67   :  { %v4786_v10 = vld [vmem:[#allocation2 + $0x720] ss:$24 sps:$4 sm:$0xff]   ;;  %v4794_v11 = vld [vmem:[#allocation2 + $0x6f4] ss:$24 sps:$4 sm:$0xff]   ;;  %v4792_v14 = vld [vmem:[#allocation2 + $0x6f0] ss:$24 sps:$4 sm:$0xff]  }
  0x68   :  { %1912 = vmatpush1.bf16.msra.mxu0 %v4716_v26  ;;  %v4789_v12 = vld [vmem:[#allocation2 + $0x128] ss:$24 sps:$4 sm:$0xff]   ;;  %v4797_v13 = vld [vmem:[#allocation2 + $0xfc] ss:$24 sps:$4 sm:$0xff]   ;;  %v4795_v16 = vld [vmem:[#allocation2 + $0xf8] ss:$24 sps:$4 sm:$0xff]  }
  0x69   :  { %1913 = vmatprep.subr.bf16.mxu0 %v4720_v27  ;;  %1955 = vmatpush1.bf16.msra.mxu1 %v4719_v28  ;;  %v4800_v15 = vld [vmem:[#allocation2 + $0x6c4] ss:$24 sps:$4 sm:$0xff]   ;;  %v4798_v18 = vld [vmem:[#allocation2 + $0x6c0] ss:$24 sps:$4 sm:$0xff]   ;;  %v4806_v19 = vld [vmem:[#allocation2 + $0x694] ss:$24 sps:$4 sm:$0xff]  }
  0x6a   :  { %1956 = vmatprep.subr.bf16.mxu1 %v4723_v29  ;;  %v4803_v17 = vld [vmem:[#allocation2 + $0xcc] ss:$24 sps:$4 sm:$0xff]   ;;  %v4801_v20 = vld [vmem:[#allocation2 + $0xc8] ss:$24 sps:$4 sm:$0xff]   ;;  %v4809_v21 = vld [vmem:[#allocation2 + $0x9c] ss:$24 sps:$4 sm:$0xff]  }
  0x6b   :  { %v4804_v22 = vld [vmem:[#allocation2 + $0x690] ss:$24 sps:$4 sm:$0xff]   ;;  %v4812_v23 = vld [vmem:[#allocation2 + $0x664] ss:$24 sps:$4 sm:$0xff]   ;;  %v4810_v26 = vld [vmem:[#allocation2 + $0x660] ss:$24 sps:$4 sm:$0xff]  }
  0x6c   :  { %1914 = vmatpush1.bf16.msra.mxu0 %v4722_v30  ;;  %v4807_v24 = vld [vmem:[#allocation2 + $0x98] ss:$24 sps:$4 sm:$0xff]   ;;  %v4815_v25 = vld [vmem:[#allocation2 + $0x6c] ss:$24 sps:$4 sm:$0xff]   ;;  %v4813_v28 = vld [vmem:[#allocation2 + $0x68] ss:$24 sps:$4 sm:$0xff]  }
  0x6d   :  { %1915 = vmatprep.subr.bf16.mxu0 %v4726_v31  ;;  %1957 = vmatpush1.bf16.msra.mxu1 %v4725_v32  ;;  %v4818_v27 = vld [vmem:[#allocation2 + $0x634] ss:$24 sps:$4 sm:$0xff]   ;;  %v4816_v30 = vld [vmem:[#allocation2 + $0x630] ss:$24 sps:$4 sm:$0xff]   ;;  %v4824_v32 = vld [vmem:[#allocation2 + $0x604] ss:$24 sps:$4 sm:$0xff]  }
  0x6e   :  { %1958 = vmatprep.subr.bf16.mxu1 %v4729_v33  ;;  %v4821_v29 = vld [vmem:[#allocation2 + $0x3c] ss:$24 sps:$4 sm:$0xff]   ;;  %v4819_v31 = vld [vmem:[#allocation2 + $0x38] ss:$24 sps:$4 sm:$0xff]  }
  0x6f   :  { %v5691_v33 = vld [vmem:[%s5783_s0 + $0x14] ss:$24 sps:$4 sm:$0xff]  }
  0x70   :  { %1916 = vmatpush2.bf16.msra.mxu0 %v4728_v34  ;;  %v4827_v34 = vld [vmem:[#allocation2 + $0xc] ss:$24 sps:$4 sm:$0xff]  }
  0x71   :  { %1917 = vmatprep.subr.bf16.mxu0 %v4732_v35  ;;  %1959 = vmatpush2.bf16.msra.mxu1 %v4731_v36  ;;  %v4822_v35 = vld [vmem:[#allocation2 + $0x600] ss:$24 sps:$4 sm:$0xff]   ;;  %v4830_v36 = vld [vmem:[#allocation2 + $0x8d4] ss:$24 sps:$4 sm:$0xff]  }
  0x72   :  { %1960 = vmatprep.subr.bf16.mxu1 %v4735_v37  ;;  %v4825_v37 = vld [vmem:[#allocation2 + $0x8] ss:$24 sps:$4 sm:$0xff]  }
  0x74   :  { %1918 = vmatpush2.bf16.msra.mxu0 %v4734_v38  ;;  %v4833_v38 = vld [vmem:[#allocation2 + $0x2dc] ss:$24 sps:$4 sm:$0xff]  }
  0x75   :  { %1919 = vmatprep.subr.bf16.mxu0 %v4738_v39  ;;  %1961 = vmatpush2.bf16.msra.mxu1 %v4737_v40  ;;  %v4828_v39 = vld [vmem:[#allocation2 + $0x8d0] ss:$24 sps:$4 sm:$0xff]   ;;  %v4836_v40 = vld [vmem:[#allocation2 + $0x8a4] ss:$24 sps:$4 sm:$0xff]  }
  0x76   :  { %1962 = vmatprep.subr.bf16.mxu1 %v4741_v41  ;;  %v4831_v41 = vld [vmem:[#allocation2 + $0x2d8] ss:$24 sps:$4 sm:$0xff]  }
  0x78   :  { %1920 = vmatpush2.bf16.msra.mxu0 %v4740_v42  ;;  %v4839_v42 = vld [vmem:[#allocation2 + $0x2ac] ss:$24 sps:$4 sm:$0xff]  }
  0x79   :  { %1921 = vmatprep.subr.bf16.mxu0 %v4744_v43  ;;  %1963 = vmatpush2.bf16.msra.mxu1 %v4743_v44  ;;  %v4834_v43 = vld [vmem:[#allocation2 + $0x8a0] ss:$24 sps:$4 sm:$0xff]   ;;  %v4842_v44 = vld [vmem:[#allocation2 + $0x874] ss:$24 sps:$4 sm:$0xff]  }
  0x7a   :  { %1964 = vmatprep.subr.bf16.mxu1 %v4747_v45  ;;  %v4837_v45 = vld [vmem:[#allocation2 + $0x2a8] ss:$24 sps:$4 sm:$0xff]  }
  0x7c   :  { %1922 = vmatpush2.bf16.msra.mxu0 %v4746_v46  ;;  %v4845_v46 = vld [vmem:[#allocation2 + $0x27c] ss:$24 sps:$4 sm:$0xff]  }
  0x7d   :  { %1923 = vmatprep.subr.bf16.mxu0 %v4750_v48  ;;  %1965 = vmatpush2.bf16.msra.mxu1 %v4749_v49  ;;  %v4848_v48 = vld [vmem:[#allocation2 + $0x844] ss:$24 sps:$4 sm:$0xff]   ;;  %v4843_v49 = vld [vmem:[#allocation2 + $0x278] ss:$24 sps:$4 sm:$0xff]  }
  0x7e   :  { %1966 = vmatprep.subr.bf16.mxu1 %v4753_v50  ;;  %v4851_v50 = vld [vmem:[#allocation2 + $0x24c] ss:$24 sps:$4 sm:$0xff]  }
  0x80   :  { %1924 = vmatpush2.bf16.msra.mxu0 %v4752_v52  ;;  %v4846_v52 = vld [vmem:[#allocation2 + $0x840] ss:$24 sps:$4 sm:$0xff]  }
  0x81   :  { %1925 = vmatprep.subr.bf16.mxu0 %v4756_v53  ;;  %1967 = vmatpush2.bf16.msra.mxu1 %v4755_v54  ;;  %v4854_v53 = vld [vmem:[#allocation2 + $0x814] ss:$24 sps:$4 sm:$0xff]   ;;  %v4849_v54 = vld [vmem:[#allocation2 + $0x248] ss:$24 sps:$4 sm:$0xff]  }
  0x82   :  { %1968 = vmatprep.subr.bf16.mxu1 %v4759_v55  ;;  %v4857_v55 = vld [vmem:[#allocation2 + $0x21c] ss:$24 sps:$4 sm:$0xff]  }
  0x84   :  { %1926 = vmatpush2.bf16.msra.mxu0 %v4758_v56  ;;  %v4852_v56 = vld [vmem:[#allocation2 + $0x810] ss:$24 sps:$4 sm:$0xff]  }
  0x85   :  { %1927 = vmatprep.subr.bf16.mxu0 %v4762_v57  ;;  %1969 = vmatpush2.bf16.msra.mxu1 %v4761_v58  ;;  %v4860_v57 = vld [vmem:[#allocation2 + $0x7e4] ss:$24 sps:$4 sm:$0xff]   ;;  %v4855_v58 = vld [vmem:[#allocation2 + $0x218] ss:$24 sps:$4 sm:$0xff]  }
  0x86   :  { %1970 = vmatprep.subr.bf16.mxu1 %v4765_v59  ;;  %v4863_v59 = vld [vmem:[#allocation2 + $0x1ec] ss:$24 sps:$4 sm:$0xff]  }
  0x88   :  { %1928 = vmatpush2.bf16.msra.mxu0 %v4764_v60  ;;  %v4858_v60 = vld [vmem:[#allocation2 + $0x7e0] ss:$24 sps:$4 sm:$0xff]  }
  0x89   :  { %1929 = vmatprep.subr.bf16.mxu0 %v4768_v61  ;;  %1971 = vmatpush2.bf16.msra.mxu1 %v4767_v62  ;;  %v4866_v61 = vld [vmem:[#allocation2 + $0x7b4] ss:$24 sps:$4 sm:$0xff]   ;;  %v4861_v62 = vld [vmem:[#allocation2 + $0x1e8] ss:$24 sps:$4 sm:$0xff]  }
  0x8a   :  { %1972 = vmatprep.subr.bf16.mxu1 %v4771_v63  ;;  %v4869_v63 = vld [vmem:[#allocation2 + $0x1bc] ss:$24 sps:$4 sm:$0xff]  }
  0x8c   :  { %1930 = vmatpush2.bf16.msra.mxu0 %v4770_v0  ;;  %v4864_v0 = vld [vmem:[#allocation2 + $0x7b0] ss:$24 sps:$4 sm:$0xff]  }
  0x8d   :  { %1985 = vmatprep.subr.bf16.mxu0 %v4779_v1  ;;  %1973 = vmatpush2.bf16.msra.mxu1 %v4775_v2  ;;  %v4872_v1 = vld [vmem:[#allocation2 + $0x784] ss:$24 sps:$4 sm:$0xff]   ;;  %v4867_v2 = vld [vmem:[#allocation2 + $0x1b8] ss:$24 sps:$4 sm:$0xff]  }
  0x8e   :  { %2028 = vmatprep.subr.bf16.mxu1 %v4785_v4  ;;  %v4875_v4 = vld [vmem:[#allocation2 + $0x18c] ss:$24 sps:$4 sm:$0xff]  }
  0x8f   :  { %1932 = vmatmul.mubr.bf16.vlgmr.msra.gmra.mxu0 %v5679_v3 }
  0x90   :  { %1986 = vmatpush1.bf16.msra.mxu0 %v4777_v5  ;;  %1975 = vmatmul.mubr.bf16.vlgmr.msra.gmra.mxu1 %v5684_v6  ;;  %v4870_v5 = vld [vmem:[#allocation2 + $0x780] ss:$24 sps:$4 sm:$0xff]  }
  0x91   :  { %1987 = vmatprep.subr.bf16.mxu0 %v4788_v7  ;;  %2029 = vmatpush1.bf16.msra.mxu1 %v4783_v8  ;;  %v4881_v7 = vld [vmem:[#allocation2 + $0x45c] ss:$24 sps:$4 sm:$0xff]   ;;  %v4873_v8 = vld [vmem:[#allocation2 + $0x188] ss:$24 sps:$4 sm:$0xff]  }
  0x92   :  { %2060 = vmatprep.mubr.bf16.mxu1 %v4773_v47  ;;  %2030 = vmatprep.subr.bf16.mxu1 %v4791_v9  ;;  %v4840_v47 = vld [vmem:[#allocation2 + $0x870] ss:$24 sps:$4 sm:$0xff]  }
  0x93   :  { %2017 = vmatprep.mubr.bf16.mxu0 %v5691_v33  ;;  %v5697_v9 = vld [vmem:[%s5783_s0 + $0x10] ss:$24 sps:$4 sm:$0xff]  }
  0x94   :  { %1988 = vmatpush1.bf16.msra.mxu0 %v4786_v10  ;;  %v4884_v10 = vld [vmem:[#allocation2 + $0x75c] ss:$24 sps:$4 sm:$0xff]  }
  0x95   :  { %1989 = vmatprep.subr.bf16.mxu0 %v4794_v11  ;;  %2031 = vmatpush1.bf16.msra.mxu1 %v4789_v12  ;;  %v4879_v11 = vld [vmem:[#allocation2 + $0x458] ss:$24 sps:$4 sm:$0xff]   ;;  %v4887_v12 = vld [vmem:[#allocation2 + $0x42c] ss:$24 sps:$4 sm:$0xff]  }
  0x96   :  { %2032 = vmatprep.subr.bf16.mxu1 %v4797_v13  ;;  %v4882_v13 = vld [vmem:[#allocation2 + $0x758] ss:$24 sps:$4 sm:$0xff]  }
  0x98   :  { %1990 = vmatpush1.bf16.msra.mxu0 %v4792_v14  ;;  %v4890_v14 = vld [vmem:[#allocation2 + $0x72c] ss:$24 sps:$4 sm:$0xff]  }
  0x99   :  { %1991 = vmatprep.subr.bf16.mxu0 %v4800_v15  ;;  %2033 = vmatpush1.bf16.msra.mxu1 %v4795_v16  ;;  %v4885_v15 = vld [vmem:[#allocation2 + $0x428] ss:$24 sps:$4 sm:$0xff]   ;;  %v4893_v16 = vld [vmem:[#allocation2 + $0x3fc] ss:$24 sps:$4 sm:$0xff]  }
  0x9a   :  { %2034 = vmatprep.subr.bf16.mxu1 %v4803_v17  ;;  %v4888_v17 = vld [vmem:[#allocation2 + $0x728] ss:$24 sps:$4 sm:$0xff]  }
  0x9c   :  { %1992 = vmatpush1.bf16.msra.mxu0 %v4798_v18  ;;  %v4896_v18 = vld [vmem:[#allocation2 + $0x6fc] ss:$24 sps:$4 sm:$0xff]  }
  0x9d   :  { %1993 = vmatprep.subr.bf16.mxu0 %v4806_v19  ;;  %2035 = vmatpush1.bf16.msra.mxu1 %v4801_v20  ;;  %v4891_v19 = vld [vmem:[#allocation2 + $0x3f8] ss:$24 sps:$4 sm:$0xff]   ;;  %v4899_v20 = vld [vmem:[#allocation2 + $0x3cc] ss:$24 sps:$4 sm:$0xff]  }
  0x9e   :  { %2036 = vmatprep.subr.bf16.mxu1 %v4809_v21  ;;  %v4894_v21 = vld [vmem:[#allocation2 + $0x6f8] ss:$24 sps:$4 sm:$0xff]  }
  0xa0   :  { %1994 = vmatpush1.bf16.msra.mxu0 %v4804_v22  ;;  %v4902_v22 = vld [vmem:[#allocation2 + $0x6cc] ss:$24 sps:$4 sm:$0xff]  }
  0xa1   :  { %1995 = vmatprep.subr.bf16.mxu0 %v4812_v23  ;;  %2037 = vmatpush1.bf16.msra.mxu1 %v4807_v24  ;;  %v4900_v23 = vld [vmem:[#allocation2 + $0x6c8] ss:$24 sps:$4 sm:$0xff]   ;;  %v4908_v24 = vld [vmem:[#allocation2 + $0x69c] ss:$24 sps:$4 sm:$0xff]  }
  0xa2   :  { %2038 = vmatprep.subr.bf16.mxu1 %v4815_v25  ;;  %v4903_v25 = vld [vmem:[#allocation2 + $0x398] ss:$24 sps:$4 sm:$0xff]  }
  0xa4   :  { %1996 = vmatpush1.bf16.msra.mxu0 %v4810_v26  ;;  %v4911_v26 = vld [vmem:[#allocation2 + $0x36c] ss:$24 sps:$4 sm:$0xff]  }
  0xa5   :  { %1997 = vmatprep.subr.bf16.mxu0 %v4818_v27  ;;  %2039 = vmatpush1.bf16.msra.mxu1 %v4813_v28  ;;  %v4906_v27 = vld [vmem:[#allocation2 + $0x698] ss:$24 sps:$4 sm:$0xff]   ;;  %v4914_v28 = vld [vmem:[#allocation2 + $0x66c] ss:$24 sps:$4 sm:$0xff]  }
  0xa6   :  { %2040 = vmatprep.subr.bf16.mxu1 %v4821_v29  ;;  %v4909_v29 = vld [vmem:[#allocation2 + $0x368] ss:$24 sps:$4 sm:$0xff]  }
  0xa8   :  { %1998 = vmatpush1.bf16.msra.mxu0 %v4816_v30  ;;  %v4917_v30 = vld [vmem:[#allocation2 + $0x33c] ss:$24 sps:$4 sm:$0xff]  }
  0xa9   :  { %1999 = vmatprep.subr.bf16.mxu0 %v4824_v32  ;;  %2041 = vmatpush1.bf16.msra.mxu1 %v4819_v31  ;;  %v4912_v31 = vld [vmem:[#allocation2 + $0x668] ss:$24 sps:$4 sm:$0xff]   ;;  %v4920_v32 = vld [vmem:[#allocation2 + $0x63c] ss:$24 sps:$4 sm:$0xff]  }
  0xaa   :  { %2042 = vmatprep.subr.bf16.mxu1 %v4827_v34  ;;  %v4923_v34 = vld [vmem:[#allocation2 + $0x30c] ss:$24 sps:$4 sm:$0xff]  }
  0xac   :  { %2000 = vmatpush1.bf16.msra.mxu0 %v4822_v35  ;;  %v4918_v35 = vld [vmem:[#allocation2 + $0x638] ss:$24 sps:$4 sm:$0xff]  }
  0xad   :  { %2001 = vmatprep.subr.bf16.mxu0 %v4830_v36  ;;  %2043 = vmatpush1.bf16.msra.mxu1 %v4825_v37  ;;  %v4926_v36 = vld [vmem:[#allocation2 + $0x60c] ss:$24 sps:$4 sm:$0xff]   ;;  %v4921_v37 = vld [vmem:[#allocation2 + $0x308] ss:$24 sps:$4 sm:$0xff]  }
  0xae   :  { %2044 = vmatprep.subr.bf16.mxu1 %v4833_v38  ;;  %v4929_v38 = vld [vmem:[#allocation2 + $0x5dc] ss:$24 sps:$4 sm:$0xff]  }
  0xb0   :  { %2002 = vmatpush2.bf16.msra.mxu0 %v4828_v39  ;;  %v4924_v39 = vld [vmem:[#allocation2 + $0x608] ss:$24 sps:$4 sm:$0xff]  }
  0xb1   :  { %2003 = vmatprep.subr.bf16.mxu0 %v4836_v40  ;;  %2045 = vmatpush2.bf16.msra.mxu1 %v4831_v41  ;;  %v4932_v40 = vld [vmem:[#allocation2 + $0x8dc] ss:$24 sps:$4 sm:$0xff]   ;;  %v4927_v41 = vld [vmem:[#allocation2 + $0x5d8] ss:$24 sps:$4 sm:$0xff]  }
  0xb2   :  { %2046 = vmatprep.subr.bf16.mxu1 %v4839_v42  ;;  %v4935_v42 = vld [vmem:[#allocation2 + $0x5ac] ss:$24 sps:$4 sm:$0xff]  }
  0xb4   :  { %2004 = vmatpush2.bf16.msra.mxu0 %v4834_v43  ;;  %v4930_v43 = vld [vmem:[#allocation2 + $0x8d8] ss:$24 sps:$4 sm:$0xff]  }
  0xb5   :  { %2005 = vmatprep.subr.bf16.mxu0 %v4842_v44  ;;  %2047 = vmatpush2.bf16.msra.mxu1 %v4837_v45  ;;  %v4938_v44 = vld [vmem:[#allocation2 + $0x8ac] ss:$24 sps:$4 sm:$0xff]   ;;  %v4933_v45 = vld [vmem:[#allocation2 + $0x5a8] ss:$24 sps:$4 sm:$0xff]  }
  0xb6   :  { %2048 = vmatprep.subr.bf16.mxu1 %v4845_v46  ;;  %v4941_v46 = vld [vmem:[#allocation2 + $0x57c] ss:$24 sps:$4 sm:$0xff]  }
  0xb8   :  { %2006 = vmatpush2.bf16.msra.mxu0 %v4840_v47  ;;  %v4936_v47 = vld [vmem:[#allocation2 + $0x8a8] ss:$24 sps:$4 sm:$0xff]  }
  0xb9   :  { %2007 = vmatprep.subr.bf16.mxu0 %v4848_v48  ;;  %2049 = vmatpush2.bf16.msra.mxu1 %v4843_v49  ;;  %v4944_v48 = vld [vmem:[#allocation2 + $0x87c] ss:$24 sps:$4 sm:$0xff]   ;;  %v4939_v49 = vld [vmem:[#allocation2 + $0x578] ss:$24 sps:$4 sm:$0xff]  }
  0xba   :  { %2050 = vmatprep.subr.bf16.mxu1 %v4851_v50  ;;  %v4947_v50 = vld [vmem:[#allocation2 + $0x54c] ss:$24 sps:$4 sm:$0xff]  }
  0xbc   :  { %2008 = vmatpush2.bf16.msra.mxu0 %v4846_v52  ;;  %v4942_v52 = vld [vmem:[#allocation2 + $0x878] ss:$24 sps:$4 sm:$0xff]  }
  0xbd   :  { %2009 = vmatprep.subr.bf16.mxu0 %v4854_v53  ;;  %2051 = vmatpush2.bf16.msra.mxu1 %v4849_v54  ;;  %v4950_v53 = vld [vmem:[#allocation2 + $0x84c] ss:$24 sps:$4 sm:$0xff]   ;;  %v4945_v54 = vld [vmem:[#allocation2 + $0x548] ss:$24 sps:$4 sm:$0xff]  }
  0xbe   :  { %2052 = vmatprep.subr.bf16.mxu1 %v4857_v55  ;;  %v4953_v55 = vld [vmem:[#allocation2 + $0x51c] ss:$24 sps:$4 sm:$0xff]  }
  0xc0   :  { %2010 = vmatpush2.bf16.msra.mxu0 %v4852_v56  ;;  %v4948_v56 = vld [vmem:[#allocation2 + $0x848] ss:$24 sps:$4 sm:$0xff]  }
  0xc1   :  { %2011 = vmatprep.subr.bf16.mxu0 %v4860_v57  ;;  %2053 = vmatpush2.bf16.msra.mxu1 %v4855_v58  ;;  %v4956_v57 = vld [vmem:[#allocation2 + $0x81c] ss:$24 sps:$4 sm:$0xff]   ;;  %v4951_v58 = vld [vmem:[#allocation2 + $0x518] ss:$24 sps:$4 sm:$0xff]  }
  0xc2   :  { %2054 = vmatprep.subr.bf16.mxu1 %v4863_v59  ;;  %v4959_v59 = vld [vmem:[#allocation2 + $0x4ec] ss:$24 sps:$4 sm:$0xff]  }
  0xc4   :  { %2012 = vmatpush2.bf16.msra.mxu0 %v4858_v60  ;;  %v4954_v60 = vld [vmem:[#allocation2 + $0x818] ss:$24 sps:$4 sm:$0xff]  }
  0xc5   :  { %2013 = vmatprep.subr.bf16.mxu0 %v4866_v61  ;;  %2055 = vmatpush2.bf16.msra.mxu1 %v4861_v62  ;;  %v4962_v61 = vld [vmem:[#allocation2 + $0x7ec] ss:$24 sps:$4 sm:$0xff]   ;;  %v4957_v62 = vld [vmem:[#allocation2 + $0x4e8] ss:$24 sps:$4 sm:$0xff]  }
  0xc6   :  { %2056 = vmatprep.subr.bf16.mxu1 %v4869_v63  ;;  %v4965_v63 = vld [vmem:[#allocation2 + $0x4bc] ss:$24 sps:$4 sm:$0xff]  }
  0xc8   :  { %2014 = vmatpush2.bf16.msra.mxu0 %v4864_v0  ;;  %v4960_v0 = vld [vmem:[#allocation2 + $0x7e8] ss:$24 sps:$4 sm:$0xff]  }
  0xc9   :  { %2015 = vmatprep.subr.bf16.mxu0 %v4872_v1  ;;  %2057 = vmatpush2.bf16.msra.mxu1 %v4867_v2  ;;  %v4968_v1 = vld [vmem:[#allocation2 + $0x7bc] ss:$24 sps:$4 sm:$0xff]   ;;  %v4963_v2 = vld [vmem:[#allocation2 + $0x4b8] ss:$24 sps:$4 sm:$0xff]  }
  0xca   :  { %2058 = vmatprep.subr.bf16.mxu1 %v4875_v4  ;;  %v4971_v4 = vld [vmem:[#allocation2 + $0x48c] ss:$24 sps:$4 sm:$0xff]  }
  0xcc   :  { %2016 = vmatpush2.bf16.msra.mxu0 %v4870_v5  ;;  %v4966_v5 = vld [vmem:[#allocation2 + $0x7b8] ss:$24 sps:$4 sm:$0xff]  }
  0xcd   :  { %2071 = vmatprep.subr.bf16.mxu0 %v4881_v7  ;;  %2059 = vmatpush2.bf16.msra.mxu1 %v4873_v8  ;;  %v4974_v7 = vld [vmem:[#allocation2 + $0x78c] ss:$24 sps:$4 sm:$0xff]   ;;  %v4969_v8 = vld [vmem:[#allocation2 + $0x488] ss:$24 sps:$4 sm:$0xff]  }
  0xce   :  { %2114 = vmatprep.subr.bf16.mxu1 %v4884_v10  ;;  %v4977_v10 = vld [vmem:[#allocation2 + $0x164] ss:$24 sps:$4 sm:$0xff]  }
  0xcf   :  { %2018 = vmatmul.mubr.bf16.vlgmr.msra.gmra.mxu0 %v5697_v9 }
  0xd0   :  { %2072 = vmatpush1.bf16.msra.mxu0 %v4879_v11  ;;  %2103 = vmatprep.mubr.bf16.mxu0 %v5673_v51  ;;  %v4897_v51 = vld [vmem:[#allocation2 + $0x3c8] ss:$24 sps:$4 sm:$0xff]  }
  0xd1   :  { %2061 = vmatmul.mubr.bf16.vlgmr.msra.gmra.mxu1 %v5679_v3  ;;  %2073 = vmatprep.subr.bf16.mxu0 %v4887_v12  ;;  %v4905_v3 = vld [vmem:[#allocation2 + $0x39c] ss:$24 sps:$4 sm:$0xff]   ;;  %v4972_v11 = vld [vmem:[#allocation2 + $0x788] ss:$24 sps:$4 sm:$0xff]  }
  0xd2   :  { %2115 = vmatpush1.bf16.msra.mxu1 %v4882_v13  ;;  %2146 = vmatprep.mubr.bf16.mxu1 %v5691_v33  ;;  %v4915_v33 = vld [vmem:[#allocation2 + $0x338] ss:$24 sps:$4 sm:$0xff]   ;;  %v4980_v12 = vld [vmem:[#allocation2 + $0x464] ss:$24 sps:$4 sm:$0xff]  }
  0xd3   :  { %2116 = vmatprep.subr.bf16.mxu1 %v4890_v14  ;;  %v4975_v13 = vld [vmem:[#allocation2 + $0x160] ss:$24 sps:$4 sm:$0xff]   ;;  %v4983_v14 = vld [vmem:[#allocation2 + $0x134] ss:$24 sps:$4 sm:$0xff]  }
  0xd4   :  { %2074 = vmatpush1.bf16.msra.mxu0 %v4885_v15  ;;  %v4978_v15 = vld [vmem:[#allocation2 + $0x460] ss:$24 sps:$4 sm:$0xff]  }
  0xd5   :  { %2075 = vmatprep.subr.bf16.mxu0 %v4893_v16  ;;  %v4986_v16 = vld [vmem:[#allocation2 + $0x434] ss:$24 sps:$4 sm:$0xff]  }
  0xd6   :  { %2117 = vmatpush1.bf16.msra.mxu1 %v4888_v17  ;;  %v4981_v17 = vld [vmem:[#allocation2 + $0x130] ss:$24 sps:$4 sm:$0xff]  }
  0xd7   :  { %2118 = vmatprep.subr.bf16.mxu1 %v4896_v18  ;;  %v5463_v18 = vld [vmem:[%s5783_s0 + $0x4] ss:$24 sps:$4 sm:$0xff]  }
  0xd8   :  { %2076 = vmatpush1.bf16.msra.mxu0 %v4891_v19  ;;  %v4989_v19 = vld [vmem:[#allocation2 + $0x104] ss:$24 sps:$4 sm:$0xff]  }
  0xd9   :  { %2077 = vmatprep.subr.bf16.mxu0 %v4899_v20  ;;  %v4984_v20 = vld [vmem:[#allocation2 + $0x430] ss:$24 sps:$4 sm:$0xff]  }
  0xda   :  { %2119 = vmatpush1.bf16.msra.mxu1 %v4894_v21  ;;  %v5464_v21 = vld [vmem:[%s5783_s0 + $0xc] ss:$24 sps:$4 sm:$0xff]  }
  0xdb   :  { %2120 = vmatprep.subr.bf16.mxu1 %v4902_v22  ;;  %v4987_v22 = vld [vmem:[#allocation2 + $0x100] ss:$24 sps:$4 sm:$0xff]  }
  0xdc   :  { %2078 = vmatpush1.bf16.msra.mxu0 %v4897_v51  ;;  %v4995_v51 = vld [vmem:[#allocation2 + $0xd4] ss:$24 sps:$4 sm:$0xff]  }
  0xdd   :  { %2079 = vmatprep.subr.bf16.mxu0 %v4905_v3  ;;  %v4990_v3 = vld [vmem:[#allocation2 + $0x400] ss:$24 sps:$4 sm:$0xff]  }
  0xde   :  { %2121 = vmatpush1.bf16.msra.mxu1 %v4900_v23  ;;  %v4998_v23 = vld [vmem:[#allocation2 + $0x3d4] ss:$24 sps:$4 sm:$0xff]  }
  0xdf   :  { %2122 = vmatprep.subr.bf16.mxu1 %v4908_v24  ;;  %v5001_v24 = vld [vmem:[#allocation2 + $0xa4] ss:$24 sps:$4 sm:$0xff]  }
  0xe0   :  { %2080 = vmatpush1.bf16.msra.mxu0 %v4903_v25  ;;  %v4996_v25 = vld [vmem:[#allocation2 + $0x3d0] ss:$24 sps:$4 sm:$0xff]  }
  0xe1   :  { %2081 = vmatprep.subr.bf16.mxu0 %v4911_v26  ;;  %v5004_v26 = vld [vmem:[#allocation2 + $0x3a4] ss:$24 sps:$4 sm:$0xff]  }
  0xe2   :  { %2123 = vmatpush1.bf16.msra.mxu1 %v4906_v27  ;;  %v4999_v27 = vld [vmem:[#allocation2 + $0xa0] ss:$24 sps:$4 sm:$0xff]  }
  0xe3   :  { %2124 = vmatprep.subr.bf16.mxu1 %v4914_v28  ;;  %v5007_v28 = vld [vmem:[#allocation2 + $0x74] ss:$24 sps:$4 sm:$0xff]  }
  0xe4   :  { %2082 = vmatpush1.bf16.msra.mxu0 %v4909_v29  ;;  %v5002_v29 = vld [vmem:[#allocation2 + $0x3a0] ss:$24 sps:$4 sm:$0xff]  }
  0xe5   :  { %2083 = vmatprep.subr.bf16.mxu0 %v4917_v30  ;;  %v5010_v30 = vld [vmem:[#allocation2 + $0x374] ss:$24 sps:$4 sm:$0xff]  }
  0xe6   :  { %2125 = vmatpush1.bf16.msra.mxu1 %v4912_v31  ;;  %v5005_v31 = vld [vmem:[#allocation2 + $0x70] ss:$24 sps:$4 sm:$0xff]  }
  0xe7   :  { %2126 = vmatprep.subr.bf16.mxu1 %v4920_v32  ;;  %v5013_v32 = vld [vmem:[#allocation2 + $0x44] ss:$24 sps:$4 sm:$0xff]  }
  0xe8   :  { %2084 = vmatpush1.bf16.msra.mxu0 %v4915_v33  ;;  %v5008_v33 = vld [vmem:[#allocation2 + $0x370] ss:$24 sps:$4 sm:$0xff]  }
  0xe9   :  { %2085 = vmatprep.subr.bf16.mxu0 %v4923_v34  ;;  %v5016_v34 = vld [vmem:[#allocation2 + $0x344] ss:$24 sps:$4 sm:$0xff]  }
  0xea   :  { %2127 = vmatpush1.bf16.msra.mxu1 %v4918_v35  ;;  %v5011_v35 = vld [vmem:[#allocation2 + $0x40] ss:$24 sps:$4 sm:$0xff]  }
  0xeb   :  { %2128 = vmatprep.subr.bf16.mxu1 %v4926_v36  ;;  %v5019_v36 = vld [vmem:[#allocation2 + $0x14] ss:$24 sps:$4 sm:$0xff]  }
  0xec   :  { %2086 = vmatpush1.bf16.msra.mxu0 %v4921_v37  ;;  %v5014_v37 = vld [vmem:[#allocation2 + $0x340] ss:$24 sps:$4 sm:$0xff]  }
  0xed   :  { %2087 = vmatprep.subr.bf16.mxu0 %v4929_v38  ;;  %v5022_v38 = vld [vmem:[#allocation2 + $0x314] ss:$24 sps:$4 sm:$0xff]  }
  0xee   :  { %2129 = vmatpush1.bf16.msra.mxu1 %v4924_v39  ;;  %v5017_v39 = vld [vmem:[#allocation2 + $0x10] ss:$24 sps:$4 sm:$0xff]  }
  0xef   :  { %2130 = vmatprep.subr.bf16.mxu1 %v4932_v40  ;;  %v5025_v40 = vld [vmem:[#allocation2 + $0x2e4] ss:$24 sps:$4 sm:$0xff]  }
  0xf0   :  { %2088 = vmatpush2.bf16.msra.mxu0 %v4927_v41  ;;  %v5020_v41 = vld [vmem:[#allocation2 + $0x310] ss:$24 sps:$4 sm:$0xff]  }
  0xf1   :  { %2089 = vmatprep.subr.bf16.mxu0 %v4935_v42  ;;  %v5028_v42 = vld [vmem:[#allocation2 + $0x5e4] ss:$24 sps:$4 sm:$0xff]  }
  0xf2   :  { %2131 = vmatpush2.bf16.msra.mxu1 %v4930_v43  ;;  %v5023_v43 = vld [vmem:[#allocation2 + $0x2e0] ss:$24 sps:$4 sm:$0xff]  }
  0xf3   :  { %2132 = vmatprep.subr.bf16.mxu1 %v4938_v44  ;;  %v5031_v44 = vld [vmem:[#allocation2 + $0x2b4] ss:$24 sps:$4 sm:$0xff]  }
  0xf4   :  { %2090 = vmatpush2.bf16.msra.mxu0 %v4933_v45  ;;  %v5026_v45 = vld [vmem:[#allocation2 + $0x5e0] ss:$24 sps:$4 sm:$0xff]  }
  0xf5   :  { %2091 = vmatprep.subr.bf16.mxu0 %v4941_v46  ;;  %v5034_v46 = vld [vmem:[#allocation2 + $0x5b4] ss:$24 sps:$4 sm:$0xff]  }
  0xf6   :  { %2133 = vmatpush2.bf16.msra.mxu1 %v4936_v47  ;;  %v5029_v47 = vld [vmem:[#allocation2 + $0x2b0] ss:$24 sps:$4 sm:$0xff]  }
  0xf7   :  { %2134 = vmatprep.subr.bf16.mxu1 %v4944_v48  ;;  %v5037_v48 = vld [vmem:[#allocation2 + $0x284] ss:$24 sps:$4 sm:$0xff]  }
  0xf8   :  { %2092 = vmatpush2.bf16.msra.mxu0 %v4939_v49  ;;  %v5032_v49 = vld [vmem:[#allocation2 + $0x5b0] ss:$24 sps:$4 sm:$0xff]  }
  0xf9   :  { %2093 = vmatprep.subr.bf16.mxu0 %v4947_v50  ;;  %v5035_v50 = vld [vmem:[#allocation2 + $0x280] ss:$24 sps:$4 sm:$0xff]  }
  0xfa   :  { %2135 = vmatpush2.bf16.msra.mxu1 %v4942_v52  ;;  %v5040_v52 = vld [vmem:[#allocation2 + $0x584] ss:$24 sps:$4 sm:$0xff]  }
  0xfb   :  { %2136 = vmatprep.subr.bf16.mxu1 %v4950_v53  ;;  %v5043_v53 = vld [vmem:[#allocation2 + $0x254] ss:$24 sps:$4 sm:$0xff]  }
  0xfc   :  { %2094 = vmatpush2.bf16.msra.mxu0 %v4945_v54  ;;  %v5038_v54 = vld [vmem:[#allocation2 + $0x580] ss:$24 sps:$4 sm:$0xff]  }
  0xfd   :  { %2095 = vmatprep.subr.bf16.mxu0 %v4953_v55  ;;  %v5046_v55 = vld [vmem:[#allocation2 + $0x554] ss:$24 sps:$4 sm:$0xff]  }
  0xfe   :  { %2137 = vmatpush2.bf16.msra.mxu1 %v4948_v56  ;;  %v5041_v56 = vld [vmem:[#allocation2 + $0x250] ss:$24 sps:$4 sm:$0xff]  }
  0xff   :  { %2138 = vmatprep.subr.bf16.mxu1 %v4956_v57  ;;  %v5049_v57 = vld [vmem:[#allocation2 + $0x224] ss:$24 sps:$4 sm:$0xff]  }
 0x100   :  { %2096 = vmatpush2.bf16.msra.mxu0 %v4951_v58  ;;  %v5044_v58 = vld [vmem:[#allocation2 + $0x550] ss:$24 sps:$4 sm:$0xff]  }
 0x101   :  { %2097 = vmatprep.subr.bf16.mxu0 %v4959_v59  ;;  %v5052_v59 = vld [vmem:[#allocation2 + $0x524] ss:$24 sps:$4 sm:$0xff]  }
 0x102   :  { %2139 = vmatpush2.bf16.msra.mxu1 %v4954_v60  ;;  %v5047_v60 = vld [vmem:[#allocation2 + $0x220] ss:$24 sps:$4 sm:$0xff]  }
 0x103   :  { %2140 = vmatprep.subr.bf16.mxu1 %v4962_v61  ;;  %v5055_v61 = vld [vmem:[#allocation2 + $0x1f4] ss:$24 sps:$4 sm:$0xff]  }
 0x104   :  { %2098 = vmatpush2.bf16.msra.mxu0 %v4957_v62  ;;  %v5050_v62 = vld [vmem:[#allocation2 + $0x520] ss:$24 sps:$4 sm:$0xff]  }
 0x105   :  { %2099 = vmatprep.subr.bf16.mxu0 %v4965_v63  ;;  %v5058_v63 = vld [vmem:[#allocation2 + $0x4f4] ss:$24 sps:$4 sm:$0xff]  }
 0x106   :  { %2141 = vmatpush2.bf16.msra.mxu1 %v4960_v0  ;;  %v5053_v0 = vld [vmem:[#allocation2 + $0x1f0] ss:$24 sps:$4 sm:$0xff]  }
 0x107   :  { %2142 = vmatprep.subr.bf16.mxu1 %v4968_v1  ;;  %v5061_v1 = vld [vmem:[#allocation2 + $0x1c4] ss:$24 sps:$4 sm:$0xff]  }
 0x108   :  { %2100 = vmatpush2.bf16.msra.mxu0 %v4963_v2  ;;  %v5056_v2 = vld [vmem:[#allocation2 + $0x4f0] ss:$24 sps:$4 sm:$0xff]  }
 0x109   :  { %2101 = vmatprep.subr.bf16.mxu0 %v4971_v4  ;;  %v5064_v4 = vld [vmem:[#allocation2 + $0x4c4] ss:$24 sps:$4 sm:$0xff]  }
 0x10a   :  { %2143 = vmatpush2.bf16.msra.mxu1 %v4966_v5  ;;  %v5059_v5 = vld [vmem:[#allocation2 + $0x1c0] ss:$24 sps:$4 sm:$0xff]  }
 0x10b   :  { %2144 = vmatprep.subr.bf16.mxu1 %v4974_v7  ;;  %v5067_v7 = vld [vmem:[#allocation2 + $0x194] ss:$24 sps:$4 sm:$0xff]  }
 0x10c   :  { %2102 = vmatpush2.bf16.msra.mxu0 %v4969_v8  ;;  %v5062_v8 = vld [vmem:[#allocation2 + $0x4c0] ss:$24 sps:$4 sm:$0xff]  }
 0x10d   :  { %2157 = vmatprep.subr.bf16.mxu0 %v4977_v10  ;;  %v5070_v10 = vld [vmem:[#allocation2 + $0x494] ss:$24 sps:$4 sm:$0xff]  }
 0x10e   :  { %2145 = vmatpush2.bf16.msra.mxu1 %v4972_v11  ;;  %v5065_v11 = vld [vmem:[#allocation2 + $0x190] ss:$24 sps:$4 sm:$0xff]  }
 0x10f   :  { %2104 = vmatmul.mubr.bf16.vlgmr.msra.gmra.mxu0 %v5684_v6  ;;  %2200 = vmatprep.subr.bf16.mxu1 %v4980_v12  ;;  %v4992_v6 = vld [vmem:[#allocation2 + $0x404] ss:$24 sps:$4 sm:$0xff]  }
 0x110   :  { %2158 = vmatpush1.bf16.msra.mxu0 %v4975_v13  ;;  %2189 = vmatprep.mubr.bf16.mxu0 %v5463_v18  ;;  %v5073_v12 = vld [vmem:[#allocation2 + $0x764] ss:$24 sps:$4 sm:$0xff]   ;;  %v5068_v13 = vld [vmem:[#allocation2 + $0x490] ss:$24 sps:$4 sm:$0xff]  }
 0x111   :  { %2147 = vmatmul.mubr.bf16.vlgmr.msra.gmra.mxu1 %v5697_v9  ;;  %2159 = vmatprep.subr.bf16.mxu0 %v4983_v14  ;;  %v4993_v9 = vld [vmem:[#allocation2 + $0xd0] ss:$24 sps:$4 sm:$0xff]  }
 0x112   :  { %2201 = vmatpush1.bf16.msra.mxu1 %v4978_v15  ;;  %2232 = vmatprep.mubr.bf16.mxu1 %v5464_v21  ;;  %v5094_v14 = vld [vmem:[#allocation6 + $0xe4] ss:$16 sps:$4 sm:$0xff]  }
 0x113   :  { %2202 = vmatprep.subr.bf16.mxu1 %v4986_v16  ;;  %v5071_v15 = vld [vmem:[#allocation2 + $0x760] ss:$24 sps:$4 sm:$0xff]   ;;  %v5076_v16 = vld [vmem:[#allocation2 + $0x734] ss:$24 sps:$4 sm:$0xff]   ;;  %v5079_v21 = vld [vmem:[#allocation2 + $0x704] ss:$24 sps:$4 sm:$0xff]  }
 0x114   :  { %2160 = vmatpush1.bf16.msra.mxu0 %v4981_v17  ;;  %v5092_v17 = vld [vmem:[#allocation6 + $0xe0] ss:$16 sps:$4 sm:$0xff]   ;;  %v5100_v18 = vld [vmem:[#allocation6 + $0xc4] ss:$16 sps:$4 sm:$0xff]  }
 0x115   :  { %2161 = vmatprep.subr.bf16.mxu0 %v4989_v19  ;;  %v5074_v19 = vld [vmem:[#allocation2 + $0x730] ss:$24 sps:$4 sm:$0xff]  }
 0x116   :  { %2203 = vmatpush1.bf16.msra.mxu1 %v4984_v20  ;;  %v5465_v20 = vld [vmem:[%s5783_s0] ss:$24 sps:$4 sm:$0xff]  }
 0x117   :  { %2204 = vmatprep.subr.bf16.mxu1 %v4992_v6  ;;  %v5098_v6 = vld [vmem:[#allocation6 + $0xc0] ss:$16 sps:$4 sm:$0xff]  }
 0x118   :  { %2162 = vmatpush1.bf16.msra.mxu0 %v4987_v22  ;;  %v5466_v22 = vld [vmem:[%s5783_s0 + $0x14] ss:$24 sps:$4 sm:$0xff]  }
 0x119   :  { %2163 = vmatprep.subr.bf16.mxu0 %v4995_v51  ;;  %v5467_v51 = vld [vmem:[%s5783_s0 + $0x8] ss:$24 sps:$4 sm:$0xff]  }
 0x11a   :  { %2205 = vmatpush1.bf16.msra.mxu1 %v4990_v3  ;;  %v5106_v3 = vld [vmem:[#allocation6 + $0xa4] ss:$16 sps:$4 sm:$0xff]  }
 0x11b   :  { %2206 = vmatprep.subr.bf16.mxu1 %v4998_v23  ;;  %v5077_v23 = vld [vmem:[#allocation2 + $0x700] ss:$24 sps:$4 sm:$0xff]  }
 0x11c   :  { %2164 = vmatpush1.bf16.msra.mxu0 %v4993_v9  ;;  %v5082_v9 = vld [vmem:[#allocation2 + $0x6d4] ss:$24 sps:$4 sm:$0xff]  }
 0x11d   :  { %2165 = vmatprep.subr.bf16.mxu0 %v5001_v24  ;;  %v5104_v24 = vld [vmem:[#allocation6 + $0xa0] ss:$16 sps:$4 sm:$0xff]  }
 0x11e   :  { %2207 = vmatpush1.bf16.msra.mxu1 %v4996_v25  ;;  %v5112_v25 = vld [vmem:[#allocation6 + $0x84] ss:$16 sps:$4 sm:$0xff]  }
 0x11f   :  { %2208 = vmatprep.subr.bf16.mxu1 %v5004_v26  ;;  %v5080_v26 = vld [vmem:[#allocation2 + $0x6d0] ss:$24 sps:$4 sm:$0xff]  }
 0x120   :  { %2166 = vmatpush1.bf16.msra.mxu0 %v4999_v27  ;;  %v5085_v27 = vld [vmem:[#allocation2 + $0x6a4] ss:$24 sps:$4 sm:$0xff]  }
 0x121   :  { %2167 = vmatprep.subr.bf16.mxu0 %v5007_v28  ;;  %v5110_v28 = vld [vmem:[#allocation6 + $0x80] ss:$16 sps:$4 sm:$0xff]  }
 0x122   :  { %2209 = vmatpush1.bf16.msra.mxu1 %v5002_v29  ;;  %v5083_v29 = vld [vmem:[#allocation2 + $0x6a0] ss:$24 sps:$4 sm:$0xff]  }
 0x123   :  { %2210 = vmatprep.subr.bf16.mxu1 %v5010_v30  ;;  %v5088_v30 = vld [vmem:[#allocation2 + $0x674] ss:$24 sps:$4 sm:$0xff]  }
 0x124   :  { %2168 = vmatpush1.bf16.msra.mxu0 %v5005_v31  ;;  %v5118_v31 = vld [vmem:[#allocation6 + $0x64] ss:$16 sps:$4 sm:$0xff]  }
 0x125   :  { %2169 = vmatprep.subr.bf16.mxu0 %v5013_v32  ;;  %v5116_v32 = vld [vmem:[#allocation6 + $0x60] ss:$16 sps:$4 sm:$0xff]  }
 0x126   :  { %2211 = vmatpush1.bf16.msra.mxu1 %v5008_v33  ;;  %v5124_v33 = vld [vmem:[#allocation6 + $0x44] ss:$16 sps:$4 sm:$0xff]  }
 0x127   :  { %2212 = vmatprep.subr.bf16.mxu1 %v5016_v34  ;;  %v5086_v34 = vld [vmem:[#allocation2 + $0x670] ss:$24 sps:$4 sm:$0xff]  }
 0x128   :  { %2170 = vmatpush1.bf16.msra.mxu0 %v5011_v35  ;;  %v5091_v35 = vld [vmem:[#allocation2 + $0x644] ss:$24 sps:$4 sm:$0xff]  }
 0x129   :  { %2171 = vmatprep.subr.bf16.mxu0 %v5019_v36  ;;  %v5122_v36 = vld [vmem:[#allocation6 + $0x40] ss:$16 sps:$4 sm:$0xff]  }
 0x12a   :  { %2213 = vmatpush1.bf16.msra.mxu1 %v5014_v37  ;;  %v5130_v37 = vld [vmem:[#allocation6 + $0x24] ss:$16 sps:$4 sm:$0xff]  }
 0x12b   :  { %2214 = vmatprep.subr.bf16.mxu1 %v5022_v38  ;;  %v5089_v38 = vld [vmem:[#allocation2 + $0x640] ss:$24 sps:$4 sm:$0xff]  }
 0x12c   :  { %2172 = vmatpush1.bf16.msra.mxu0 %v5017_v39  ;;  %v5097_v39 = vld [vmem:[#allocation2 + $0x614] ss:$24 sps:$4 sm:$0xff]  }
 0x12d   :  { %2173 = vmatprep.subr.bf16.mxu0 %v5025_v40  ;;  %v5128_v40 = vld [vmem:[#allocation6 + $0x20] ss:$16 sps:$4 sm:$0xff]  }
 0x12e   :  { %2215 = vmatpush1.bf16.msra.mxu1 %v5020_v41  ;;  %v5136_v41 = vld [vmem:[#allocation6 + $0x4] ss:$16 sps:$4 sm:$0xff]  }
 0x12f   :  { %2216 = vmatprep.subr.bf16.mxu1 %v5028_v42  ;;  %v5095_v42 = vld [vmem:[#allocation2 + $0x610] ss:$24 sps:$4 sm:$0xff]  }
 0x130   :  { %2174 = vmatpush2.bf16.msra.mxu0 %v5023_v43  ;;  %v5103_v43 = vld [vmem:[#allocation2 + $0x8e4] ss:$24 sps:$4 sm:$0xff]  }
 0x131   :  { %2175 = vmatprep.subr.bf16.mxu0 %v5031_v44  ;;  %v5134_v44 = vld [vmem:[#allocation6] ss:$16 sps:$4 sm:$0xff]  }
 0x132   :  { %2217 = vmatpush2.bf16.msra.mxu1 %v5026_v45  ;;  %v5142_v45 = vld [vmem:[#allocation6 + $0x1e4] ss:$16 sps:$4 sm:$0xff]  }
 0x133   :  { %2218 = vmatprep.subr.bf16.mxu1 %v5034_v46  ;;  %v5101_v46 = vld [vmem:[#allocation2 + $0x8e0] ss:$24 sps:$4 sm:$0xff]  }
 0x134   :  { %2176 = vmatpush2.bf16.msra.mxu0 %v5029_v47  ;;  %v5109_v47 = vld [vmem:[#allocation2 + $0x8b4] ss:$24 sps:$4 sm:$0xff]  }
 0x135   :  { %2177 = vmatprep.subr.bf16.mxu0 %v5037_v48  ;;  %v5140_v48 = vld [vmem:[#allocation6 + $0x1e0] ss:$16 sps:$4 sm:$0xff]  }
 0x136   :  { %2219 = vmatpush2.bf16.msra.mxu1 %v5032_v49  ;;  %v5148_v49 = vld [vmem:[#allocation6 + $0x1c4] ss:$16 sps:$4 sm:$0xff]  }
 0x137   :  { %2220 = vmatprep.subr.bf16.mxu1 %v5040_v52  ;;  %v5115_v52 = vld [vmem:[#allocation2 + $0x884] ss:$24 sps:$4 sm:$0xff]  }
 0x138   :  { %2178 = vmatpush2.bf16.msra.mxu0 %v5035_v50  ;;  %v5107_v50 = vld [vmem:[#allocation2 + $0x8b0] ss:$24 sps:$4 sm:$0xff]  }
 0x139   :  { %2179 = vmatprep.subr.bf16.mxu0 %v5043_v53  ;;  %v5146_v53 = vld [vmem:[#allocation6 + $0x1c0] ss:$16 sps:$4 sm:$0xff]  }
 0x13a   :  { %2221 = vmatpush2.bf16.msra.mxu1 %v5038_v54  ;;  %v5151_v54 = vld [vmem:[#allocation6 + $0x1a4] ss:$16 sps:$4 sm:$0xff]  }
 0x13b   :  { %2222 = vmatprep.subr.bf16.mxu1 %v5046_v55  ;;  %v5113_v55 = vld [vmem:[#allocation2 + $0x880] ss:$24 sps:$4 sm:$0xff]  }
 0x13c   :  { %2180 = vmatpush2.bf16.msra.mxu0 %v5041_v56  ;;  %v5121_v56 = vld [vmem:[#allocation2 + $0x854] ss:$24 sps:$4 sm:$0xff]  }
 0x13d   :  { %2181 = vmatprep.subr.bf16.mxu0 %v5049_v57  ;;  %v5149_v57 = vld [vmem:[#allocation6 + $0x1a0] ss:$16 sps:$4 sm:$0xff]  }
 0x13e   :  { %2223 = vmatpush2.bf16.msra.mxu1 %v5044_v58  ;;  %v5154_v58 = vld [vmem:[#allocation6 + $0x184] ss:$16 sps:$4 sm:$0xff]  }
 0x13f   :  { %2224 = vmatprep.subr.bf16.mxu1 %v5052_v59  ;;  %v5119_v59 = vld [vmem:[#allocation2 + $0x850] ss:$24 sps:$4 sm:$0xff]  }
 0x140   :  { %2182 = vmatpush2.bf16.msra.mxu0 %v5047_v60  ;;  %v5127_v60 = vld [vmem:[#allocation2 + $0x824] ss:$24 sps:$4 sm:$0xff]  }
 0x141   :  { %2183 = vmatprep.subr.bf16.mxu0 %v5055_v61  ;;  %v5152_v61 = vld [vmem:[#allocation6 + $0x180] ss:$16 sps:$4 sm:$0xff]  }
 0x142   :  { %2225 = vmatpush2.bf16.msra.mxu1 %v5050_v62  ;;  %v5157_v62 = vld [vmem:[#allocation6 + $0x164] ss:$16 sps:$4 sm:$0xff]  }
 0x143   :  { %2226 = vmatprep.subr.bf16.mxu1 %v5058_v63  ;;  %v5125_v63 = vld [vmem:[#allocation2 + $0x820] ss:$24 sps:$4 sm:$0xff]  }
 0x144   :  { %2184 = vmatpush2.bf16.msra.mxu0 %v5053_v0  ;;  %v399_v0 = vlaneseq }
 0x145   :  { %2185 = vmatprep.subr.bf16.mxu0 %v5061_v1  ;;  %v5133_v1 = vld [vmem:[#allocation2 + $0x7f4] ss:$24 sps:$4 sm:$0xff]  }
 0x146   :  { %2227 = vmatpush2.bf16.msra.mxu1 %v5056_v2  ;;  %v5155_v2 = vld [vmem:[#allocation6 + $0x160] ss:$16 sps:$4 sm:$0xff]  }
 0x147   :  { %2228 = vmatprep.subr.bf16.mxu1 %v5064_v4  ;;  %v5160_v4 = vld [vmem:[#allocation6 + $0x144] ss:$16 sps:$4 sm:$0xff]  }
 0x148   :  { %2186 = vmatpush2.bf16.msra.mxu0 %v5059_v5  ;;  %v5720_v5 = vshrl.u32 %v399_v0, 7 }
 0x149   :  { %2187 = vmatprep.subr.bf16.mxu0 %v5067_v7  ;;  %v5131_v7 = vld [vmem:[#allocation2 + $0x7f0] ss:$24 sps:$4 sm:$0xff]  }
 0x14a   :  { %2229 = vmatpush2.bf16.msra.mxu1 %v5062_v8 }
 0x14b   :  { %2230 = vmatprep.subr.bf16.mxu1 %v5070_v10  ;;  %v5139_v10 = vld [vmem:[#allocation2 + $0x7c4] ss:$24 sps:$4 sm:$0xff]  }
 0x14c   :  { %2188 = vmatpush2.bf16.msra.mxu0 %v5065_v11  ;;  %v5158_v11 = vld [vmem:[#allocation6 + $0x140] ss:$16 sps:$4 sm:$0xff]  }
 0x14d   :  { %2243 = vmatprep.subr.bf16.mxu0 %v5073_v12  ;;  %v5163_v12 = vld [vmem:[#allocation6 + $0x124] ss:$16 sps:$4 sm:$0xff]  }
 0x14e   :  { %2231 = vmatpush2.bf16.msra.mxu1 %v5068_v13  ;;  %v405_v13 = vsub.s32 1, %v5720_v5 }
 0x14f   :  { %2190 = vmatmul.mubr.bf16.vlgmr.msra.gmra.mxu0 %v5465_v20  ;;  %3478 = vmatprep.subr.bf16.mxu1 %v5094_v14  ;;  %v1933_v8 = vpop.f32.mrf.mxu0  ;;  %v5137_v14 = vld [vmem:[#allocation2 + $0x7c0] ss:$24 sps:$4 sm:$0xff]   ;;  %v401_v20 = vsub.s32 0, %v5720_v5 }
 0x150   :  { %2244 = vmatpush1.bf16.msra.mxu0 %v5071_v15  ;;  %2275 = vmatprep.mubr.bf16.mxu0 %v5466_v22  ;;  %v5723_v15 = vld [vmem:[#allocation4] sm:$0x3f]  ;;  %v5143_v22 = vld [vmem:[#allocation2 + $0x790] ss:$24 sps:$4 sm:$0xff]  }
 0x151   :  { %2233 = vmatmul.mubr.bf16.vlgmr.msra.gmra.mxu1 %v5467_v51  ;;  %2245 = vmatprep.subr.bf16.mxu0 %v5076_v16  ;;  %v1935_v16 = vpop.f32.mrf.mxu0 }
 0x152   :  { %3479 = vmatpush1.bf16.msra.mxu1 %v5092_v17  ;;  %v1976_v17 = vpop.f32.mrf.mxu1 }
 0x153   :  { %3480 = vmatprep.subr.bf16.mxu1 %v5100_v18  ;;  %v5145_v18 = vld [vmem:[#allocation2 + $0x794] ss:$24 sps:$4 sm:$0xff]   ;;  %v1937_v51 = vpop.f32.mrf.mxu0 }
 0x154   :  { %2246 = vmatpush1.bf16.msra.mxu0 %v5074_v19  ;;  %v5161_v19 = vld [vmem:[#allocation6 + $0x120] ss:$16 sps:$4 sm:$0xff]  }
 0x155   :  { %2247 = vmatprep.subr.bf16.mxu0 %v5079_v21  ;;  %v5166_v21 = vld [vmem:[#allocation6 + $0x104] ss:$16 sps:$4 sm:$0xff]  }
 0x156   :  { %3481 = vmatpush1.bf16.msra.mxu1 %v5098_v6  ;;  %v406_v6 = vrot.slane %v5723_v15, %v405_v13 }
 0x157   :  { %3482 = vmatprep.subr.bf16.mxu1 %v5106_v3  ;;  %v1978_v3 = vpop.f32.mrf.mxu1 }
 0x158   :  { %2248 = vmatpush1.bf16.msra.mxu0 %v5077_v23  ;;  %v5169_v23 = vld [vmem:[#allocation6 + $0x2e4] ss:$16 sps:$4 sm:$0xff]  }
 0x159   :  { %2249 = vmatprep.subr.bf16.mxu0 %v5082_v9  ;;  %v5164_v9 = vld [vmem:[#allocation6 + $0x100] ss:$16 sps:$4 sm:$0xff]  }
 0x15a   :  { %3483 = vmatpush1.bf16.msra.mxu1 %v5104_v24  ;;  %v402_v24 = vrot.slane %v5723_v15, %v401_v20 }
 0x15b   :  { %3484 = vmatprep.subr.bf16.mxu1 %v5112_v25  ;;  %v1936_v25 = vadd.f32 %v1935_v16, %v406_v6  ;;  %v5277_v16 = vld [vmem:[#allocation6 + $0x4a4] ss:$16 sps:$4 sm:$0xff]  }
 0x15c   :  { %2250 = vmatpush1.bf16.msra.mxu0 %v5080_v26  ;;  %v5167_v26 = vld [vmem:[#allocation6 + $0x2e0] ss:$16 sps:$4 sm:$0xff]  }
 0x15d   :  { %2251 = vmatprep.subr.bf16.mxu0 %v5085_v27  ;;  %v1939_v27 = vpop.f32.mrf.mxu0 }
 0x15e   :  { %3485 = vmatpush1.bf16.msra.mxu1 %v5110_v28  ;;  %v1980_v28 = vpop.f32.mrf.mxu1 }
 0x15f   :  { %3486 = vmatprep.subr.bf16.mxu1 %v5118_v31  ;;  %v1934_v31 = vadd.f32 %v1933_v8, %v402_v24  ;;  %v5193_v8 = vld [vmem:[#allocation6 + $0x3e4] ss:$16 sps:$4 sm:$0xff]  }
 0x160   :  { %2252 = vmatpush1.bf16.msra.mxu0 %v5083_v29  ;;  %v5172_v29 = vld [vmem:[#allocation6 + $0x2c4] ss:$16 sps:$4 sm:$0xff]  }
 0x161   :  { %2253 = vmatprep.subr.bf16.mxu0 %v5088_v30  ;;  %v1938_v30 = vadd.f32 %v1937_v51, %v402_v24  ;;  %v5202_v51 = vld [vmem:[#allocation6 + $0x384] ss:$16 sps:$4 sm:$0xff]  }
 0x162   :  { %3487 = vmatpush1.bf16.msra.mxu1 %v5116_v32  ;;  %v5205_v24 = vld [vmem:[#allocation6 + $0x364] ss:$16 sps:$4 sm:$0xff]  }
 0x163   :  { %3488 = vmatprep.subr.bf16.mxu1 %v5124_v33  ;;  %v5468_v33 = vld [vmem:[%s5783_s0 + $0x10] ss:$24 sps:$4 sm:$0xff]  }
 0x164   :  { %2254 = vmatpush1.bf16.msra.mxu0 %v5086_v34  ;;  %v1979_v34 = vadd.f32 %v1978_v3, %v1936_v25  ;;  %v5289_v3 = vld [vmem:[#allocation6 + $0x464] ss:$16 sps:$4 sm:$0xff]  }
 0x165   :  { %2255 = vmatprep.subr.bf16.mxu0 %v5091_v35  ;;  %v1940_v35 = vadd.f32 %v1939_v27, %v406_v6  ;;  %v5197_v6 = vld [vmem:[#allocation6 + $0x3a0] ss:$16 sps:$4 sm:$0xff]   ;;  %v5295_v25 = vld [vmem:[#allocation6 + $0x444] ss:$16 sps:$4 sm:$0xff]  }
 0x166   :  { %3489 = vmatpush1.bf16.msra.mxu1 %v5122_v36  ;;  %v5170_v36 = vld [vmem:[#allocation6 + $0x2c0] ss:$16 sps:$4 sm:$0xff]  }
 0x167   :  { %3490 = vmatprep.subr.bf16.mxu1 %v5130_v37  ;;  %v1982_v37 = vpop.f32.mrf.mxu1  ;;  %v5293_v27 = vld [vmem:[#allocation6 + $0x440] ss:$16 sps:$4 sm:$0xff]  }
 0x168   :  { %2256 = vmatpush1.bf16.msra.mxu0 %v5089_v38 }
 0x169   :  { %2257 = vmatprep.subr.bf16.mxu0 %v5097_v39  ;;  %v5175_v39 = vld [vmem:[#allocation6 + $0x2a4] ss:$16 sps:$4 sm:$0xff]  }
 0x16a   :  { %3491 = vmatpush1.bf16.msra.mxu1 %v5128_v40  ;;  %v1981_v40 = vadd.f32 %v1980_v28, %v1938_v30  ;;  %v5208_v28 = vld [vmem:[#allocation6 + $0x344] ss:$16 sps:$4 sm:$0xff]   ;;  %v5206_v30 = vld [vmem:[#allocation6 + $0x340] ss:$16 sps:$4 sm:$0xff]  }
 0x16b   :  { %3492 = vmatprep.subr.bf16.mxu1 %v5136_v41 }
 0x16c   :  { %2258 = vmatpush1.bf16.msra.mxu0 %v5095_v42  ;;  %v1977_v42 = vadd.f32 %v1976_v17, %v1934_v31  ;;  %v5194_v17 = vld [vmem:[#allocation6 + $0x3c0] ss:$16 sps:$4 sm:$0xff]  }
 0x16d   :  { %2259 = vmatprep.subr.bf16.mxu0 %v5103_v43  ;;  %v5299_v31 = vld [vmem:[#allocation6 + $0x420] ss:$16 sps:$4 sm:$0xff]  }
 0x16e   :  { %3493 = vmatpush1.bf16.msra.mxu1 %v5134_v44  ;;  %v1983_v44 = vadd.f32 %v1982_v37, %v1940_v35  ;;  %v5209_v35 = vld [vmem:[#allocation6 + $0x320] ss:$16 sps:$4 sm:$0xff]  }
 0x16f   :  { %3494 = vmatprep.subr.bf16.mxu1 %v5142_v45 }
 0x170   :  { %2260 = vmatpush2.bf16.msra.mxu0 %v5101_v46  ;;  %v5173_v46 = vld [vmem:[#allocation6 + $0x2a0] ss:$16 sps:$4 sm:$0xff]  }
 0x171   :  { %2261 = vmatprep.subr.bf16.mxu0 %v5109_v47 }
 0x172   :  { %3495 = vmatpush2.bf16.msra.mxu1 %v5140_v48 }
 0x173   :  { %3496 = vmatprep.subr.bf16.mxu1 %v5148_v49  ;;  %v5178_v49 = vld [vmem:[#allocation6 + $0x284] ss:$16 sps:$4 sm:$0xff]  }
 0x174   :  { %2262 = vmatpush2.bf16.msra.mxu0 %v5107_v50 }
 0x175   :  { %2263 = vmatprep.subr.bf16.mxu0 %v5115_v52  ;;  %v5176_v52 = vld [vmem:[#allocation6 + $0x280] ss:$16 sps:$4 sm:$0xff]  }
 0x176   :  { %3497 = vmatpush2.bf16.msra.mxu1 %v5146_v53  ;;  %v5181_v53 = vld [vmem:[#allocation6 + $0x264] ss:$16 sps:$4 sm:$0xff]  }
 0x177   :  { %3498 = vmatprep.subr.bf16.mxu1 %v5151_v54  ;;  %v5179_v54 = vld [vmem:[#allocation6 + $0x260] ss:$16 sps:$4 sm:$0xff]  }
 0x178   :  { %2264 = vmatpush2.bf16.msra.mxu0 %v5113_v55  ;;  %v5184_v55 = vld [vmem:[#allocation6 + $0x244] ss:$16 sps:$4 sm:$0xff]  }
 0x179   :  { %2265 = vmatprep.subr.bf16.mxu0 %v5121_v56  ;;  %v5182_v56 = vld [vmem:[#allocation6 + $0x240] ss:$16 sps:$4 sm:$0xff]  }
 0x17a   :  { %3499 = vmatpush2.bf16.msra.mxu1 %v5149_v57  ;;  %v5187_v57 = vld [vmem:[#allocation6 + $0x224] ss:$16 sps:$4 sm:$0xff]  }
 0x17b   :  { %3500 = vmatprep.subr.bf16.mxu1 %v5154_v58 }
 0x17c   :  { %2266 = vmatpush2.bf16.msra.mxu0 %v5119_v59 }
 0x17d   :  { %2267 = vmatprep.subr.bf16.mxu0 %v5127_v60  ;;  %v5185_v60 = vld [vmem:[#allocation6 + $0x220] ss:$16 sps:$4 sm:$0xff]  }
 0x17e   :  { %3501 = vmatpush2.bf16.msra.mxu1 %v5152_v61 }
 0x17f   :  { %3502 = vmatprep.subr.bf16.mxu1 %v5157_v62  ;;  %v5190_v62 = vld [vmem:[#allocation6 + $0x204] ss:$16 sps:$4 sm:$0xff]  }
 0x180   :  { %2268 = vmatpush2.bf16.msra.mxu0 %v5125_v63 }
 0x181   :  { %2269 = vmatprep.subr.bf16.mxu0 %v5133_v1 }
 0x182   :  { %3503 = vmatpush2.bf16.msra.mxu1 %v5155_v2  ;;  %v5265_v2 = vld [vmem:[#allocation6 + $0x4e4] ss:$16 sps:$4 sm:$0xff]  }
 0x183   :  { %3504 = vmatprep.subr.bf16.mxu1 %v5160_v4  ;;  %v5188_v4 = vld [vmem:[#allocation6 + $0x200] ss:$16 sps:$4 sm:$0xff]  }
 0x184   :  { %2270 = vmatpush2.bf16.msra.mxu0 %v5131_v7  ;;  %v5263_v7 = vld [vmem:[#allocation6 + $0x4e0] ss:$16 sps:$4 sm:$0xff]  }
 0x185   :  { %2271 = vmatprep.subr.bf16.mxu0 %v5139_v10  ;;  %v5271_v10 = vld [vmem:[#allocation6 + $0x4c4] ss:$16 sps:$4 sm:$0xff]  }
 0x186   :  { %3505 = vmatpush2.bf16.msra.mxu1 %v5158_v11  ;;  %v5191_v11 = vld [vmem:[#allocation6 + $0x3e0] ss:$16 sps:$4 sm:$0xff]  }
 0x187   :  { %3506 = vmatprep.subr.bf16.mxu1 %v5163_v12  ;;  %v5269_v12 = vld [vmem:[#allocation6 + $0x4c0] ss:$16 sps:$4 sm:$0xff]  }
 0x188   :  { %2272 = vmatpush2.bf16.msra.mxu0 %v5137_v14  ;;  %v5196_v14 = vld [vmem:[#allocation6 + $0x3c4] ss:$16 sps:$4 sm:$0xff]  }
 0x189   :  { %2273 = vmatprep.subr.bf16.mxu0 %v5145_v18  ;;  %v5275_v18 = vld [vmem:[#allocation6 + $0x4a0] ss:$16 sps:$4 sm:$0xff]  }
 0x18a   :  { %3507 = vmatpush2.bf16.msra.mxu1 %v5161_v19  ;;  %v5199_v19 = vld [vmem:[#allocation6 + $0x3a4] ss:$16 sps:$4 sm:$0xff]  }
 0x18b   :  { %3508 = vmatprep.subr.bf16.mxu1 %v5166_v21  ;;  %v5283_v21 = vld [vmem:[#allocation6 + $0x484] ss:$16 sps:$4 sm:$0xff]  }
 0x18c   :  { %2274 = vmatpush2.bf16.msra.mxu0 %v5143_v22  ;;  %v5281_v22 = vld [vmem:[#allocation6 + $0x480] ss:$16 sps:$4 sm:$0xff]  }
 0x18d   :  { %3521 = vmatprep.subr.bf16.mxu0 %v5169_v23  ;;  %v5200_v23 = vld [vmem:[#allocation6 + $0x380] ss:$16 sps:$4 sm:$0xff]  }
 0x18e   :  { %3509 = vmatpush2.bf16.msra.mxu1 %v5164_v9  ;;  %v5287_v9 = vld [vmem:[#allocation6 + $0x460] ss:$16 sps:$4 sm:$0xff]  }
 0x18f   :  { %v2019_v32 = vpop.f32.mrf.mxu0  ;;  %2276 = vmatmul.mubr.bf16.vlgmr.msra.gmra.mxu0 %v5468_v33  ;;  %3564 = vmatprep.subr.bf16.mxu1 %v5265_v2  ;;  %v5211_v33 = vld [vmem:[#allocation6 + $0x324] ss:$16 sps:$4 sm:$0xff]  }
 0x190   :  { %3522 = vmatpush1.bf16.msra.mxu0 %v5167_v26  ;;  %v2020_v47 = vadd.f32 %v2019_v32, %v1977_v42  ;;  %v5203_v26 = vld [vmem:[#allocation6 + $0x360] ss:$16 sps:$4 sm:$0xff]   ;;  %v5331_v2 = vld [vmem:[#allocation6 + $0x584] ss:$16 sps:$4 sm:$0xff]  }
 0x191   :  { %v2021_v38 = vpop.f32.mrf.mxu0  ;;  %3523 = vmatprep.subr.bf16.mxu0 %v5172_v29  ;;  %v5301_v29 = vld [vmem:[#allocation6 + $0x424] ss:$16 sps:$4 sm:$0xff]   ;;  %v2062_v32 = vpop.f32.mrf.mxu1  ;;  %v5212_v42 = vld [vmem:[#allocation6 + $0x300] ss:$16 sps:$4 sm:$0xff]  }
 0x192   :  { %v2022_v41 = vadd.f32 %v2021_v38, %v1979_v34  ;;  %v5307_v34 = vld [vmem:[#allocation6 + $0x404] ss:$16 sps:$4 sm:$0xff]  }
 0x193   :  { %v2023_v43 = vpop.f32.mrf.mxu0  ;;  %v2064_v37 = vpop.f32.mrf.mxu1  ;;  %v5214_v38 = vld [vmem:[#allocation6 + $0x304] ss:$16 sps:$4 sm:$0xff]  }
 0x194   :  { %v2024_v45 = vadd.f32 %v2023_v43, %v1981_v40  ;;  %3524 = vmatpush1.bf16.msra.mxu0 %v5170_v36  ;;  %5439 = vtanh.f32 %v2022_v41  ;;  %v5305_v36 = vld [vmem:[#allocation6 + $0x400] ss:$16 sps:$4 sm:$0xff]   ;;  %v409_v40 = vsub.s32 2, %v5720_v5  ;;  %v5313_v41 = vld [vmem:[#allocation6 + $0x5e4] ss:$16 sps:$4 sm:$0xff]  }
 0x195   :  { %v2025_v48 = vpop.f32.mrf.mxu0  ;;  %3525 = vmatprep.subr.bf16.mxu0 %v5175_v39  ;;  %v413_v39 = vsub.s32 3, %v5720_v5  ;;  %v5311_v43 = vld [vmem:[#allocation6 + $0x5e0] ss:$16 sps:$4 sm:$0xff]  }
 0x196   :  { %v2026_v50 = vadd.f32 %v2025_v48, %v1983_v44  ;;  %5441 = vtanh.f32 %v2024_v45  ;;  %v2066_v44 = vpop.f32.mrf.mxu1  ;;  %v5217_v45 = vld [vmem:[#allocation6 + $0xec] ss:$16 sps:$4 sm:$0xff]   ;;  %v5319_v48 = vld [vmem:[#allocation6 + $0x5c4] ss:$16 sps:$4 sm:$0xff]  }
 0x198   :  { %5443 = vtanh.f32 %v2026_v50  ;;  %3526 = vmatpush1.bf16.msra.mxu0 %v5173_v46  ;;  %v414_v46 = vrot.slane %v5723_v15, %v413_v39  ;;  %v2068_v50 = vpop.f32.mrf.mxu1 }
 0x199   :  { %5445 = vtanh.f32 %v2020_v47  ;;  %3527 = vmatprep.subr.bf16.mxu0 %v5178_v49  ;;  %v410_v47 = vrot.slane %v5723_v15, %v409_v40  ;;  %v5317_v49 = vld [vmem:[#allocation6 + $0x5c0] ss:$16 sps:$4 sm:$0xff]  }
 0x19c   :  { %3528 = vmatpush1.bf16.msra.mxu0 %v5176_v52  ;;  %v2065_v52 = vadd.f32 %v2064_v37, %v414_v46  ;;  %v5226_v37 = vld [vmem:[#allocation6 + $0x8c] ss:$16 sps:$4 sm:$0xff]  }
 0x19d   :  { %3529 = vmatprep.subr.bf16.mxu0 %v5181_v53  ;;  %v2063_v53 = vadd.f32 %v2062_v32, %v410_v47 }
 0x1a0   :  { %3530 = vmatpush1.bf16.msra.mxu0 %v5179_v54 }
 0x1a1   :  { %3531 = vmatprep.subr.bf16.mxu0 %v5184_v55  ;;  %v5440_v58 = vpop.eup %5439  ;;  %v5325_v55 = vld [vmem:[#allocation6 + $0x5a4] ss:$16 sps:$4 sm:$0xff]  }
 0x1a3   :  { %v5442_v59 = vpop.eup %5441 }
 0x1a4   :  { %3532 = vmatpush1.bf16.msra.mxu0 %v5182_v56  ;;  %v5323_v56 = vld [vmem:[#allocation6 + $0x5a0] ss:$16 sps:$4 sm:$0xff]  }
 0x1a5   :  { %v5444_v61 = vpop.eup %5443  ;;  %3533 = vmatprep.subr.bf16.mxu0 %v5187_v57 }
 0x1a6   :  { %v5446_v63 = vpop.eup %5445  ;;  %v5735_v0 = vpack.c.bf16 %v5444_v61, %v5440_v58 }
 0x1a7   :  { %v5737_v1 = vpack.c.bf16 %v5442_v59, %v5446_v63  ;;  %v2067_v59 = vadd.f32 %v2066_v44, %v410_v47  ;;  %v5230_v44 = vld [vmem:[#allocation6 + $0x48] ss:$16 sps:$4 sm:$0xff]  }
 0x1a8   :  { %3510 = vmatprep.mubr.bf16.mxu1 %v5735_v0  ;;  %3534 = vmatpush1.bf16.msra.mxu0 %v5185_v60  ;;  %v5236_v47 = vld [vmem:[#allocation6 + $0x8] ss:$16 sps:$4 sm:$0xff]  }
 0x1a9   :  { %3511 = vmatmul.mubr.bf16.vlgmr.msra.gmra.mxu1 %v5737_v1  ;;  %3535 = vmatprep.subr.bf16.mxu0 %v5190_v62 }
 0x1aa   :  { %3565 = vmatpush1.bf16.msra.mxu1 %v5263_v7 }
 0x1ab   :  { %3566 = vmatprep.subr.bf16.mxu1 %v5271_v10  ;;  %v5329_v10 = vld [vmem:[#allocation6 + $0x580] ss:$16 sps:$4 sm:$0xff]  }
 0x1ac   :  { %3536 = vmatpush1.bf16.msra.mxu0 %v5188_v4  ;;  %v2069_v4 = vadd.f32 %v2068_v50, %v414_v46  ;;  %v5238_v46 = vld [vmem:[#allocation6 + $0xc] ss:$16 sps:$4 sm:$0xff]  }
 0x1ad   :  { %3537 = vmatprep.subr.bf16.mxu0 %v5193_v8  ;;  %v5244_v50 = vld [vmem:[#allocation6 + $0x1cc] ss:$16 sps:$4 sm:$0xff]  }
 0x1ae   :  { %3567 = vmatpush1.bf16.msra.mxu1 %v5269_v12 }
 0x1af   :  { %3568 = vmatprep.subr.bf16.mxu1 %v5277_v16 }
 0x1b0   :  { %3538 = vmatpush2.bf16.msra.mxu0 %v5191_v11 }
 0x1b1   :  { %3539 = vmatprep.subr.bf16.mxu0 %v5196_v14 }
 0x1b2   :  { %3569 = vmatpush1.bf16.msra.mxu1 %v5275_v18 }
 0x1b3   :  { %3570 = vmatprep.subr.bf16.mxu1 %v5283_v21 }
 0x1b4   :  { %3540 = vmatpush2.bf16.msra.mxu0 %v5194_v17 }
 0x1b5   :  { %3541 = vmatprep.subr.bf16.mxu0 %v5199_v19  ;;  %v5337_v19 = vld [vmem:[#allocation6 + $0x564] ss:$16 sps:$4 sm:$0xff]  }
 0x1b6   :  { %3571 = vmatpush1.bf16.msra.mxu1 %v5281_v22  ;;  %v5343_v22 = vld [vmem:[#allocation6 + $0x544] ss:$16 sps:$4 sm:$0xff]  }
 0x1b7   :  { %3572 = vmatprep.subr.bf16.mxu1 %v5289_v3  ;;  %v5349_v3 = vld [vmem:[#allocation6 + $0x524] ss:$16 sps:$4 sm:$0xff]  }
 0x1b8   :  { %3542 = vmatpush2.bf16.msra.mxu0 %v5197_v6  ;;  %v5335_v6 = vld [vmem:[#allocation6 + $0x560] ss:$16 sps:$4 sm:$0xff]  }
 0x1b9   :  { %3543 = vmatprep.subr.bf16.mxu0 %v5202_v51  ;;  %v5341_v51 = vld [vmem:[#allocation6 + $0x540] ss:$16 sps:$4 sm:$0xff]  }
 0x1ba   :  { %3573 = vmatpush1.bf16.msra.mxu1 %v5287_v9  ;;  %v5355_v9 = vld [vmem:[#allocation6 + $0x504] ss:$16 sps:$4 sm:$0xff]  }
 0x1bb   :  { %3574 = vmatprep.subr.bf16.mxu1 %v5295_v25 }
 0x1bc   :  { %3544 = vmatpush2.bf16.msra.mxu0 %v5200_v23  ;;  %v5347_v23 = vld [vmem:[#allocation6 + $0x520] ss:$16 sps:$4 sm:$0xff]  }
 0x1bd   :  { %3545 = vmatprep.subr.bf16.mxu0 %v5205_v24  ;;  %v5353_v24 = vld [vmem:[#allocation6 + $0x500] ss:$16 sps:$4 sm:$0xff]  }
 0x1be   :  { %3575 = vmatpush1.bf16.msra.mxu1 %v5293_v27 }
 0x1bf   :  { %3576 = vmatprep.subr.bf16.mxu1 %v5301_v29 }
 0x1c0   :  { %3546 = vmatpush2.bf16.msra.mxu0 %v5203_v26 }
 0x1c1   :  { %3547 = vmatprep.subr.bf16.mxu0 %v5208_v28  ;;  %v5361_v28 = vld [vmem:[#allocation6 + $0x2ec] ss:$16 sps:$4 sm:$0xff]  }
 0x1c2   :  { %3577 = vmatpush1.bf16.msra.mxu1 %v5299_v31  ;;  %v5215_v31 = vld [vmem:[#allocation6 + $0xe8] ss:$16 sps:$4 sm:$0xff]  }
 0x1c3   :  { %3578 = vmatprep.subr.bf16.mxu1 %v5307_v34  ;;  %v5218_v34 = vld [vmem:[#allocation6 + $0xc8] ss:$16 sps:$4 sm:$0xff]  }
 0x1c4   :  { %3548 = vmatpush2.bf16.msra.mxu0 %v5206_v30 }
 0x1c5   :  { %3549 = vmatprep.subr.bf16.mxu0 %v5211_v33  ;;  %v5220_v33 = vld [vmem:[#allocation6 + $0xcc] ss:$16 sps:$4 sm:$0xff]  }
 0x1c6   :  { %3579 = vmatpush1.bf16.msra.mxu1 %v5305_v36  ;;  %v5221_v36 = vld [vmem:[#allocation6 + $0xa8] ss:$16 sps:$4 sm:$0xff]  }
 0x1c7   :  { %3580 = vmatprep.subr.bf16.mxu1 %v5313_v41  ;;  %v5229_v41 = vld [vmem:[#allocation6 + $0x6c] ss:$16 sps:$4 sm:$0xff]  }
 0x1c8   :  { %3550 = vmatpush2.bf16.msra.mxu0 %v5209_v35  ;;  %v5223_v35 = vld [vmem:[#allocation6 + $0xac] ss:$16 sps:$4 sm:$0xff]  }
 0x1c9   :  { %3551 = vmatprep.subr.bf16.mxu0 %v5214_v38  ;;  %v5224_v38 = vld [vmem:[#allocation6 + $0x88] ss:$16 sps:$4 sm:$0xff]  }
 0x1ca   :  { %3581 = vmatpush2.bf16.msra.mxu1 %v5311_v43  ;;  %v5232_v43 = vld [vmem:[#allocation6 + $0x4c] ss:$16 sps:$4 sm:$0xff]  }
 0x1cb   :  { %3582 = vmatprep.subr.bf16.mxu1 %v5319_v48  ;;  %v5241_v48 = vld [vmem:[#allocation6 + $0x1ec] ss:$16 sps:$4 sm:$0xff]  }
 0x1cc   :  { %3552 = vmatpush2.bf16.msra.mxu0 %v5212_v42  ;;  %v5227_v42 = vld [vmem:[#allocation6 + $0x68] ss:$16 sps:$4 sm:$0xff]  }
 0x1cd   :  { %3607 = vmatprep.subr.bf16.mxu0 %v5217_v45  ;;  %v5235_v45 = vld [vmem:[#allocation6 + $0x2c] ss:$16 sps:$4 sm:$0xff]  }
 0x1ce   :  { %3583 = vmatpush2.bf16.msra.mxu1 %v5317_v49  ;;  %v5239_v49 = vld [vmem:[#allocation6 + $0x1e8] ss:$16 sps:$4 sm:$0xff]  }
 0x1cf   :  { %v2105_v54 = vpop.f32.mrf.mxu0  ;;  %3584 = vmatprep.subr.bf16.mxu1 %v5325_v55  ;;  %v5250_v55 = vld [vmem:[#allocation6 + $0x18c] ss:$16 sps:$4 sm:$0xff]  }
 0x1d0   :  { %v2106_v61 = vadd.f32 %v2105_v54, %v2063_v53  ;;  %v5247_v53 = vld [vmem:[#allocation6 + $0x1ac] ss:$16 sps:$4 sm:$0xff]   ;;  %v5245_v54 = vld [vmem:[#allocation6 + $0x1a8] ss:$16 sps:$4 sm:$0xff]  }
 0x1d1   :  { %v2107_v57 = vpop.f32.mrf.mxu0  ;;  %v2148_v58 = vpop.f32.mrf.mxu1 }
 0x1d2   :  { %v2108_v60 = vadd.f32 %v2107_v57, %v2065_v52  ;;  %3585 = vmatpush2.bf16.msra.mxu1 %v5323_v56  ;;  %v2149_v17 = vadd.f32 %v2148_v58, %v2106_v61  ;;  %v5242_v52 = vld [vmem:[#allocation6 + $0x1c8] ss:$16 sps:$4 sm:$0xff]   ;;  %v5253_v57 = vld [vmem:[#allocation6 + $0x16c] ss:$16 sps:$4 sm:$0xff]  }
 0x1d3   :  { %v2109_v62 = vpop.f32.mrf.mxu0  ;;  %v2150_v63 = vpop.f32.mrf.mxu1  ;;  %3586 = vmatprep.subr.bf16.mxu1 %v5331_v2  ;;  %v5248_v56 = vld [vmem:[#allocation6 + $0x188] ss:$16 sps:$4 sm:$0xff]   ;;  %v5259_v61 = vld [vmem:[#allocation6 + $0x12c] ss:$16 sps:$4 sm:$0xff]  }
 0x1d4   :  { %v2110_v7 = vadd.f32 %v2109_v62, %v2067_v59  ;;  %v2151_v8 = vadd.f32 %v2150_v63, %v2108_v60  ;;  %v5251_v58 = vld [vmem:[#allocation6 + $0x168] ss:$16 sps:$4 sm:$0xff]   ;;  %v5256_v59 = vld [vmem:[#allocation6 + $0x14c] ss:$16 sps:$4 sm:$0xff]  }
 0x1d5   :  { %v2111_v11 = vpop.f32.mrf.mxu0  ;;  %v2152_v12 = vpop.f32.mrf.mxu1  ;;  %v5254_v60 = vld [vmem:[#allocation6 + $0x148] ss:$16 sps:$4 sm:$0xff]   ;;  %v5262_v63 = vld [vmem:[#allocation6 + $0x10c] ss:$16 sps:$4 sm:$0xff]  }
 0x1d6   :  { %v2112_v14 = vadd.f32 %v2111_v11, %v2069_v4  ;;  %v2153_v16 = vadd.f32 %v2152_v12, %v2110_v7  ;;  %3587 = vmatpush2.bf16.msra.mxu1 %v5329_v10  ;;  %5447 = vtanh.f32 %v2151_v8  ;;  %v5257_v62 = vld [vmem:[#allocation6 + $0x128] ss:$16 sps:$4 sm:$0xff]   ;;  %v5268_v4 = vld [vmem:[#allocation6 + $0x4ec] ss:$16 sps:$4 sm:$0xff]  }
 0x1d7   :  { %v2154_v18 = vpop.f32.mrf.mxu1  ;;  %3588 = vmatprep.subr.bf16.mxu1 %v5337_v19  ;;  %v5260_v2 = vld [vmem:[#allocation6 + $0x108] ss:$16 sps:$4 sm:$0xff]   ;;  %v5274_v8 = vld [vmem:[#allocation6 + $0x4cc] ss:$16 sps:$4 sm:$0xff]  }
 0x1d8   :  { %v2155_v21 = vadd.f32 %v2154_v18, %v2112_v14  ;;  %5449 = vtanh.f32 %v2153_v16  ;;  %v5266_v7 = vld [vmem:[#allocation6 + $0x4e8] ss:$16 sps:$4 sm:$0xff]   ;;  %v5280_v11 = vld [vmem:[#allocation6 + $0x4ac] ss:$16 sps:$4 sm:$0xff]  }
 0x1d9   :  { %v5272_v10 = vld [vmem:[#allocation6 + $0x4c8] ss:$16 sps:$4 sm:$0xff]   ;;  %v5286_v14 = vld [vmem:[#allocation6 + $0x48c] ss:$16 sps:$4 sm:$0xff]  }
 0x1da   :  { %5451 = vtanh.f32 %v2155_v21  ;;  %3589 = vmatpush2.bf16.msra.mxu1 %v5335_v6  ;;  %v5278_v12 = vld [vmem:[#allocation6 + $0x4a8] ss:$16 sps:$4 sm:$0xff]   ;;  %v5298_v19 = vld [vmem:[#allocation6 + $0x44c] ss:$16 sps:$4 sm:$0xff]  }
 0x1db   :  { %5453 = vtanh.f32 %v2149_v17  ;;  %3590 = vmatprep.subr.bf16.mxu1 %v5343_v22  ;;  %v5284_v16 = vld [vmem:[#allocation6 + $0x488] ss:$16 sps:$4 sm:$0xff]   ;;  %v5292_v17 = vld [vmem:[#allocation6 + $0x46c] ss:$16 sps:$4 sm:$0xff]  }
 0x1dc   :  { %v5290_v18 = vld [vmem:[#allocation6 + $0x468] ss:$16 sps:$4 sm:$0xff]  }
 0x1dd   :  { %v5296_v21 = vld [vmem:[#allocation6 + $0x448] ss:$16 sps:$4 sm:$0xff]  }
 0x1de   :  { %3591 = vmatpush2.bf16.msra.mxu1 %v5341_v51  ;;  %v5302_v6 = vld [vmem:[#allocation6 + $0x428] ss:$16 sps:$4 sm:$0xff]   ;;  %v5310_v51 = vld [vmem:[#allocation6 + $0x40c] ss:$16 sps:$4 sm:$0xff]  }
 0x1df   :  { %3592 = vmatprep.subr.bf16.mxu1 %v5349_v3  ;;  %v421_v3 = vsub.s32 5, %v5720_v5 }
 0x1e2   :  { %3593 = vmatpush2.bf16.msra.mxu1 %v5347_v23  ;;  %v5308_v23 = vld [vmem:[#allocation6 + $0x408] ss:$16 sps:$4 sm:$0xff]  }
 0x1e3   :  { %v5448_v25 = vpop.eup %5447  ;;  %3594 = vmatprep.subr.bf16.mxu1 %v5355_v9 }
 0x1e5   :  { %v5450_v26 = vpop.eup %5449 }
 0x1e6   :  { %3595 = vmatpush2.bf16.msra.mxu1 %v5353_v24 }
 0x1e7   :  { %v5452_v27 = vpop.eup %5451  ;;  %3650 = vmatprep.subr.bf16.mxu1 %v5361_v28  ;;  %v5314_v28 = vld [vmem:[#allocation6 + $0x5e8] ss:$16 sps:$4 sm:$0xff]  }
 0x1e8   :  { %v5454_v29 = vpop.eup %5453  ;;  %v5749_v30 = vpack.c.bf16 %v5452_v27, %v5448_v25  ;;  %v5316_v25 = vld [vmem:[#allocation6 + $0x5ec] ss:$16 sps:$4 sm:$0xff]   ;;  %v422_v27 = vrot.slane %v5723_v15, %v421_v3 }
 0x1e9   :  { %v5751_v32 = vpack.c.bf16 %v5450_v26, %v5454_v29  ;;  %v417_v26 = vsub.s32 4, %v5720_v5  ;;  %v5373_v3 = vld [vmem:[#allocation6 + $0x26c] ss:$16 sps:$4 sm:$0xff]  }
 0x1ea   :  { %3553 = vmatprep.mubr.bf16.mxu0 %v5749_v30 }
 0x1eb   :  { %3554 = vmatmul.mubr.bf16.vlgmr.msra.gmra.mxu0 %v5751_v32 }
 0x1ec   :  { %3608 = vmatpush1.bf16.msra.mxu0 %v5215_v31  ;;  %3639 = vmatprep.mubr.bf16.mxu0 %v5735_v0  ;;  %v5233_v0 = vld [vmem:[#allocation6 + $0x28] ss:$16 sps:$4 sm:$0xff]  }
 0x1ed   :  { %3609 = vmatprep.subr.bf16.mxu0 %v5220_v33  ;;  %v5322_v33 = vld [vmem:[#allocation6 + $0x5cc] ss:$16 sps:$4 sm:$0xff]  }
 0x1f0   :  { %3610 = vmatpush1.bf16.msra.mxu0 %v5218_v34  ;;  %v418_v34 = vrot.slane %v5723_v15, %v417_v26  ;;  %v5382_v26 = vld [vmem:[#allocation6 + $0x20c] ss:$16 sps:$4 sm:$0xff]  }
 0x1f1   :  { %3611 = vmatprep.subr.bf16.mxu0 %v5223_v35 }
 0x1f4   :  { %3612 = vmatpush1.bf16.msra.mxu0 %v5221_v36  ;;  %v5320_v36 = vld [vmem:[#allocation6 + $0x5c8] ss:$16 sps:$4 sm:$0xff]  }
 0x1f5   :  { %3613 = vmatprep.subr.bf16.mxu0 %v5226_v37 }
 0x1f8   :  { %3614 = vmatpush1.bf16.msra.mxu0 %v5224_v38 }
 0x1f9   :  { %3615 = vmatprep.subr.bf16.mxu0 %v5229_v41  ;;  %v5328_v41 = vld [vmem:[#allocation6 + $0x5ac] ss:$16 sps:$4 sm:$0xff]  }
 0x1fc   :  { %3616 = vmatpush1.bf16.msra.mxu0 %v5227_v42 }
 0x1fd   :  { %3617 = vmatprep.subr.bf16.mxu0 %v5232_v43 }
 0x200   :  { %3618 = vmatpush1.bf16.msra.mxu0 %v5230_v44 }
 0x201   :  { %3619 = vmatprep.subr.bf16.mxu0 %v5235_v45 }
 0x204   :  { %3620 = vmatpush1.bf16.msra.mxu0 %v5233_v0 }
 0x205   :  { %3621 = vmatprep.subr.bf16.mxu0 %v5238_v46  ;;  %v5326_v46 = vld [vmem:[#allocation6 + $0x5a8] ss:$16 sps:$4 sm:$0xff]  }
 0x208   :  { %3622 = vmatpush1.bf16.msra.mxu0 %v5236_v47 }
 0x209   :  { %3623 = vmatprep.subr.bf16.mxu0 %v5241_v48 }
 0x20c   :  { %3624 = vmatpush2.bf16.msra.mxu0 %v5239_v49  ;;  %v5334_v49 = vld [vmem:[#allocation6 + $0x58c] ss:$16 sps:$4 sm:$0xff]  }
 0x20d   :  { %3625 = vmatprep.subr.bf16.mxu0 %v5244_v50 }
 0x20f   :  { %v2191_v22 = vpop.f32.mrf.mxu0 }
 0x210   :  { %3626 = vmatpush2.bf16.msra.mxu0 %v5242_v52  ;;  %v2192_v43 = vadd.f32 %v2191_v22, %v418_v34  ;;  %v5370_v22 = vld [vmem:[#allocation6 + $0x28c] ss:$16 sps:$4 sm:$0xff]  }
 0x211   :  { %3627 = vmatprep.subr.bf16.mxu0 %v5247_v53  ;;  %v2193_v9 = vpop.f32.mrf.mxu0  ;;  %v2234_v24 = vpop.f32.mrf.mxu1 }
 0x212   :  { %v2194_v35 = vadd.f32 %v2193_v9, %v422_v27  ;;  %v2235_v52 = vadd.f32 %v2234_v24, %v2192_v43  ;;  %v5376_v9 = vld [vmem:[#allocation6 + $0x24c] ss:$16 sps:$4 sm:$0xff]   ;;  %v5374_v24 = vld [vmem:[#allocation6 + $0x248] ss:$16 sps:$4 sm:$0xff]  }
 0x213   :  { %v2195_v29 = vpop.f32.mrf.mxu0  ;;  %v2236_v31 = vpop.f32.mrf.mxu1  ;;  %v5398_v43 = vld [vmem:[#allocation6 + $0x348] ss:$16 sps:$4 sm:$0xff]  }
 0x214   :  { %3628 = vmatpush2.bf16.msra.mxu0 %v5245_v54  ;;  %v2196_v42 = vadd.f32 %v2195_v29, %v418_v34  ;;  %v2237_v45 = vadd.f32 %v2236_v31, %v2194_v35  ;;  %v5383_v29 = vld [vmem:[#allocation6 + $0x3e8] ss:$16 sps:$4 sm:$0xff]   ;;  %v5388_v31 = vld [vmem:[#allocation6 + $0x3cc] ss:$16 sps:$4 sm:$0xff]  }
 0x215   :  { %3629 = vmatprep.subr.bf16.mxu0 %v5250_v55  ;;  %v2197_v37 = vpop.f32.mrf.mxu0  ;;  %v2238_v38 = vpop.f32.mrf.mxu1  ;;  %v5391_v34 = vld [vmem:[#allocation6 + $0x3ac] ss:$16 sps:$4 sm:$0xff]   ;;  %v5389_v35 = vld [vmem:[#allocation6 + $0x3a8] ss:$16 sps:$4 sm:$0xff]  }
 0x216   :  { %v2198_v0 = vadd.f32 %v2197_v37, %v422_v27  ;;  %v2239_v50 = vadd.f32 %v2238_v38, %v2196_v42  ;;  %v5380_v27 = vld [vmem:[#allocation6 + $0x208] ss:$16 sps:$4 sm:$0xff]   ;;  %v5397_v38 = vld [vmem:[#allocation6 + $0x36c] ss:$16 sps:$4 sm:$0xff]  }
 0x217   :  { %v2240_v47 = vpop.f32.mrf.mxu1  ;;  %v5392_v37 = vld [vmem:[#allocation6 + $0x388] ss:$16 sps:$4 sm:$0xff]   ;;  %v5400_v42 = vld [vmem:[#allocation6 + $0x34c] ss:$16 sps:$4 sm:$0xff]  }
 0x218   :  { %3630 = vmatpush2.bf16.msra.mxu0 %v5248_v56  ;;  %v2241_v54 = vadd.f32 %v2240_v47, %v2198_v0  ;;  %v5332_v56 = vld [vmem:[#allocation6 + $0x588] ss:$16 sps:$4 sm:$0xff]   ;;  %v5406_v0 = vld [vmem:[#allocation6 + $0x30c] ss:$16 sps:$4 sm:$0xff]  }
 0x219   :  { %3631 = vmatprep.subr.bf16.mxu0 %v5253_v57  ;;  %v5407_v47 = vld [vmem:[#allocation9 + $0x78] sm:$0xff]  }
 0x21c   :  { %3632 = vmatpush2.bf16.msra.mxu0 %v5251_v58 }
 0x21d   :  { %3633 = vmatprep.subr.bf16.mxu0 %v5256_v59  ;;  %v5340_v59 = vld [vmem:[#allocation6 + $0x56c] ss:$16 sps:$4 sm:$0xff]  }
 0x220   :  { %3634 = vmatpush2.bf16.msra.mxu0 %v5254_v60 }
 0x221   :  { %3635 = vmatprep.subr.bf16.mxu0 %v5259_v61  ;;  %v5338_v61 = vld [vmem:[#allocation6 + $0x568] ss:$16 sps:$4 sm:$0xff]  }
 0x224   :  { %3636 = vmatpush2.bf16.msra.mxu0 %v5257_v62  ;;  %v5346_v62 = vld [vmem:[#allocation6 + $0x54c] ss:$16 sps:$4 sm:$0xff]  }
 0x225   :  { %3637 = vmatprep.subr.bf16.mxu0 %v5262_v63  ;;  %v5344_v63 = vld [vmem:[#allocation6 + $0x548] ss:$16 sps:$4 sm:$0xff]  }
 0x228   :  { %3638 = vmatpush2.bf16.msra.mxu0 %v5260_v2  ;;  %v5352_v2 = vld [vmem:[#allocation6 + $0x52c] ss:$16 sps:$4 sm:$0xff]  }
 0x229   :  { %3693 = vmatprep.subr.bf16.mxu0 %v5268_v4  ;;  %v5350_v4 = vld [vmem:[#allocation6 + $0x528] ss:$16 sps:$4 sm:$0xff]  }
 0x22b   :  { %3640 = vmatmul.mubr.bf16.vlgmr.msra.gmra.mxu0 %v5737_v1  ;;  %v5304_v1 = vld [vmem:[#allocation6 + $0x42c] ss:$16 sps:$4 sm:$0xff]  }
 0x22c   :  { %3694 = vmatpush1.bf16.msra.mxu0 %v5266_v7  ;;  %v5358_v7 = vld [vmem:[#allocation6 + $0x50c] ss:$16 sps:$4 sm:$0xff]  }
 0x22d   :  { %3695 = vmatprep.subr.bf16.mxu0 %v5274_v8 }
 0x230   :  { %3696 = vmatpush1.bf16.msra.mxu0 %v5272_v10 }
 0x231   :  { %3697 = vmatprep.subr.bf16.mxu0 %v5280_v11  ;;  %v5356_v11 = vld [vmem:[#allocation6 + $0x508] ss:$16 sps:$4 sm:$0xff]  }
 0x234   :  { %3698 = vmatpush1.bf16.msra.mxu0 %v5278_v12 }
 0x235   :  { %3699 = vmatprep.subr.bf16.mxu0 %v5286_v14 }
 0x238   :  { %3700 = vmatpush1.bf16.msra.mxu0 %v5284_v16 }
 0x239   :  { %3701 = vmatprep.subr.bf16.mxu0 %v5292_v17  ;;  %v5359_v17 = vld [vmem:[#allocation6 + $0x2e8] ss:$16 sps:$4 sm:$0xff]  }
 0x23c   :  { %3702 = vmatpush1.bf16.msra.mxu0 %v5290_v18 }
 0x23d   :  { %3703 = vmatprep.subr.bf16.mxu0 %v5298_v19  ;;  %v5364_v19 = vld [vmem:[#allocation6 + $0x2cc] ss:$16 sps:$4 sm:$0xff]  }
 0x240   :  { %3704 = vmatpush1.bf16.msra.mxu0 %v5296_v21  ;;  %v5362_v21 = vld [vmem:[#allocation6 + $0x2c8] ss:$16 sps:$4 sm:$0xff]  }
 0x241   :  { %3705 = vmatprep.subr.bf16.mxu0 %v5304_v1  ;;  %v5367_v1 = vld [vmem:[#allocation6 + $0x2ac] ss:$16 sps:$4 sm:$0xff]  }
 0x244   :  { %3706 = vmatpush1.bf16.msra.mxu0 %v5302_v6  ;;  %v5365_v6 = vld [vmem:[#allocation6 + $0x2a8] ss:$16 sps:$4 sm:$0xff]  }
 0x245   :  { %3707 = vmatprep.subr.bf16.mxu0 %v5310_v51  ;;  %v5368_v51 = vld [vmem:[#allocation6 + $0x288] ss:$16 sps:$4 sm:$0xff]  }
 0x248   :  { %3708 = vmatpush1.bf16.msra.mxu0 %v5308_v23  ;;  %v5371_v23 = vld [vmem:[#allocation6 + $0x268] ss:$16 sps:$4 sm:$0xff]  }
 0x249   :  { %3709 = vmatprep.subr.bf16.mxu0 %v5316_v25  ;;  %v5377_v25 = vld [vmem:[#allocation6 + $0x228] ss:$16 sps:$4 sm:$0xff]  }
 0x24c   :  { %3710 = vmatpush2.bf16.msra.mxu0 %v5314_v28  ;;  %v5385_v28 = vld [vmem:[#allocation6 + $0x3ec] ss:$16 sps:$4 sm:$0xff]  }
 0x24d   :  { %3711 = vmatprep.subr.bf16.mxu0 %v5322_v33  ;;  %v5386_v33 = vld [vmem:[#allocation6 + $0x3c8] ss:$16 sps:$4 sm:$0xff]  }
 0x24f   :  { %v2277_v44 = vpop.f32.mrf.mxu0 }
 0x250   :  { %3712 = vmatpush2.bf16.msra.mxu0 %v5320_v36  ;;  %v2278_v57 = vadd.f32 %v2277_v44, %v2235_v52  ;;  %v5394_v36 = vld [vmem:[#allocation6 + $0x38c] ss:$16 sps:$4 sm:$0xff]  }
 0x251   :  { %v2279_v48 = vpop.f32.mrf.mxu0  ;;  %3713 = vmatprep.subr.bf16.mxu0 %v5328_v41  ;;  %v5395_v41 = vld [vmem:[#allocation6 + $0x368] ss:$16 sps:$4 sm:$0xff]   ;;  %v5403_v44 = vld [vmem:[#allocation6 + $0x32c] ss:$16 sps:$4 sm:$0xff]  }
 0x252   :  { %v2280_v15 = vadd.f32 %v2279_v48, %v2237_v45  ;;  %v5401_v45 = vld [vmem:[#allocation6 + $0x328] ss:$16 sps:$4 sm:$0xff]   ;;  %v5408_v48 = vld [vmem:[#allocation9 + $0x38] sm:$0xff]   ;;  %v5412_v52 = vld [vmem:[#allocation9 + $0x28] sm:$0xff]  }
 0x253   :  { %v2281_v53 = vpop.f32.mrf.mxu0 }
 0x254   :  { %v2282_v55 = vadd.f32 %v2281_v53, %v2239_v50  ;;  %3714 = vmatpush2.bf16.msra.mxu0 %v5326_v46  ;;  %5455 = vtanh.f32 %v2280_v15  ;;  %v5404_v46 = vld [vmem:[#allocation6 + $0x308] ss:$16 sps:$4 sm:$0xff]   ;;  %v5411_v15 = vld [vmem:[#allocation9 + $0x68] sm:$0xff]  }
 0x255   :  { %v2283_v58 = vpop.f32.mrf.mxu0  ;;  %3715 = vmatprep.subr.bf16.mxu0 %v5334_v49  ;;  %v5409_v49 = vld [vmem:[#allocation9 + $0x70] sm:$0xff]   ;;  %v5413_v53 = vld [vmem:[#allocation9 + $0x60] sm:$0xff]  }
 0x256   :  { %v2284_v60 = vadd.f32 %v2283_v58, %v2241_v54  ;;  %5457 = vtanh.f32 %v2282_v55  ;;  %v5410_v50 = vld [vmem:[#allocation9 + $0x30] sm:$0xff]   ;;  %v5414_v54 = vld [vmem:[#allocation9 + $0x20] sm:$0xff]   ;;  %v5415_v55 = vld [vmem:[#allocation9 + $0x58] sm:$0xff]  }
 0x257   :  { %v5418_v58 = vld [vmem:[#allocation9 + $0x10] sm:$0xff]  }
 0x258   :  { %5459 = vtanh.f32 %v2284_v60  ;;  %3716 = vmatpush2.bf16.msra.mxu0 %v5332_v56  ;;  %v5416_v56 = vld [vmem:[#allocation9 + $0x18] sm:$0xff]   ;;  %v5421_v60 = vld [vmem:[#allocation9 + $0x40] sm:$0xff]  }
 0x259   :  { %5461 = vtanh.f32 %v2278_v57  ;;  %3717 = vmatprep.subr.bf16.mxu0 %v5340_v59  ;;  %v5417_v57 = vld [vmem:[#allocation9 + $0x50] sm:$0xff]   ;;  %v5420_v59 = vld [vmem:[#allocation9 + $0x8] sm:$0xff]  }
 0x25c   :  { %3718 = vmatpush2.bf16.msra.mxu0 %v5338_v61  ;;  %v5422_v61 = vld [vmem:[#allocation9] sm:$0xff]  }
 0x25d   :  { %3719 = vmatprep.subr.bf16.mxu0 %v5346_v62  ;;  %v5423_v62 = vld [vmem:[#allocation9 + $0xf8] sm:$0xff]  }
 0x260   :  { %3720 = vmatpush2.bf16.msra.mxu0 %v5344_v63 }
 0x261   :  { %3721 = vmatprep.subr.bf16.mxu0 %v5352_v2  ;;  %v5456_v8 = vpop.eup %5455 }
 0x263   :  { %v5458_v10 = vpop.eup %5457 }
 0x264   :  { %3722 = vmatpush2.bf16.msra.mxu0 %v5350_v4 }
 0x265   :  { %v5460_v12 = vpop.eup %5459  ;;  %3723 = vmatprep.subr.bf16.mxu0 %v5358_v7 }
 0x266   :  { %v5462_v14 = vpop.eup %5461  ;;  %v2303_v16 = vpack.c.bf16 %v5460_v12, %v5456_v8 }
 0x267   :  { %v2302_v18 = vpack.c.bf16 %v5458_v10, %v5462_v14  ;;  %v5763_v10 = vld [vmem:[#allocation7] sm:$0xf] }
 0x268   :  { %3724 = vmatpush2.bf16.msra.mxu0 %v5356_v11  ;;  %3596 = vmatprep.mubr.bf16.mxu1 %v2303_v16  ;;  %v2505_v11 = vrot.slane %v5763_v10, %v405_v13  ;;  %v2501_v12 = vrot.slane %v5763_v10, %v401_v20 }
 0x269   :  { %3725 = vmatprep.mubr.bf16.mxu0 %v2303_v16  ;;  %3597 = vmatmul.mubr.bf16.vlgmr.msra.gmra.mxu1 %v2302_v18  ;;  %v3512_v63 = vpop.f32.mrf.mxu1 }
 0x26a   :  { %3651 = vmatpush1.bf16.msra.mxu1 %v5359_v17  ;;  %3682 = vmatprep.mubr.bf16.mxu1 %v5749_v30  ;;  %v5379_v30 = vld [vmem:[#allocation6 + $0x22c] ss:$16 sps:$4 sm:$0xff]  }
 0x26b   :  { %3726 = vmatmul.mubr.bf16.vlgmr.msra.gmra.mxu0 %v2302_v18  ;;  %3652 = vmatprep.subr.bf16.mxu1 %v5364_v19  ;;  %v3514_v2 = vpop.f32.mrf.mxu1 }
 0x26c   :  { %v3515_v18 = vadd.f32 %v3514_v2, %v2505_v11 }
 0x26d   :  { %v3516_v7 = vpop.f32.mrf.mxu1 }
 0x26e   :  { %3653 = vmatpush1.bf16.msra.mxu1 %v5362_v21  ;;  %v3517_v19 = vadd.f32 %v3516_v7, %v2501_v12  ;;  %v3513_v21 = vadd.f32 %v3512_v63, %v2501_v12 }
 0x26f   :  { %3654 = vmatprep.subr.bf16.mxu1 %v5367_v1  ;;  %v3518_v14 = vpop.f32.mrf.mxu1 }
 0x272   :  { %3655 = vmatpush1.bf16.msra.mxu1 %v5365_v6 }
 0x273   :  { %3656 = vmatprep.subr.bf16.mxu1 %v5370_v22  ;;  %v3519_v22 = vadd.f32 %v3518_v14, %v2505_v11 }
 0x276   :  { %3657 = vmatpush1.bf16.msra.mxu1 %v5368_v51 }
 0x277   :  { %3658 = vmatprep.subr.bf16.mxu1 %v5373_v3 }
 0x27a   :  { %3659 = vmatpush1.bf16.msra.mxu1 %v5371_v23 }
 0x27b   :  { %3660 = vmatprep.subr.bf16.mxu1 %v5376_v9 }
 0x27e   :  { %3661 = vmatpush1.bf16.msra.mxu1 %v5374_v24 }
 0x27f   :  { %3662 = vmatprep.subr.bf16.mxu1 %v5379_v30 }
 0x282   :  { %3663 = vmatpush1.bf16.msra.mxu1 %v5377_v25 }
 0x283   :  { %3664 = vmatprep.subr.bf16.mxu1 %v5382_v26 }
 0x286   :  { %3665 = vmatpush1.bf16.msra.mxu1 %v5380_v27 }
 0x287   :  { %3666 = vmatprep.subr.bf16.mxu1 %v5385_v28 }
 0x28a   :  { %3667 = vmatpush2.bf16.msra.mxu1 %v5383_v29 }
 0x28b   :  { %3668 = vmatprep.subr.bf16.mxu1 %v5388_v31 }
 0x28e   :  { %3669 = vmatpush2.bf16.msra.mxu1 %v5386_v33 }
 0x28f   :  { %3670 = vmatprep.subr.bf16.mxu1 %v5391_v34  ;;  %v5424_v34 = vld [vmem:[#allocation9 + $0xb8] sm:$0xff]  }
 0x292   :  { %3671 = vmatpush2.bf16.msra.mxu1 %v5389_v35 }
 0x293   :  { %3672 = vmatprep.subr.bf16.mxu1 %v5394_v36  ;;  %v5425_v36 = vld [vmem:[#allocation9 + $0xf0] sm:$0xff]  }
 0x296   :  { %3673 = vmatpush2.bf16.msra.mxu1 %v5392_v37  ;;  %v5426_v37 = vld [vmem:[#allocation9 + $0xb0] sm:$0xff]  }
 0x297   :  { %3674 = vmatprep.subr.bf16.mxu1 %v5397_v38  ;;  %v5427_v38 = vld [vmem:[#allocation9 + $0xe8] sm:$0xff]  }
 0x29a   :  { %3675 = vmatpush2.bf16.msra.mxu1 %v5395_v41  ;;  %v5428_v41 = vld [vmem:[#allocation9 + $0xa8] sm:$0xff]  }
 0x29b   :  { %3676 = vmatprep.subr.bf16.mxu1 %v5400_v42  ;;  %v5429_v42 = vld [vmem:[#allocation9 + $0xe0] sm:$0xff]  }
 0x29e   :  { %3677 = vmatpush2.bf16.msra.mxu1 %v5398_v43  ;;  %v5430_v43 = vld [vmem:[#allocation9 + $0xa0] sm:$0xff]  }
 0x29f   :  { %3678 = vmatprep.subr.bf16.mxu1 %v5403_v44  ;;  %v5431_v44 = vld [vmem:[#allocation9 + $0xd8] sm:$0xff]  }
 0x2a2   :  { %3679 = vmatpush2.bf16.msra.mxu1 %v5401_v45  ;;  %v5432_v45 = vld [vmem:[#allocation9 + $0x98] sm:$0xff]  }
 0x2a3   :  { %3680 = vmatprep.subr.bf16.mxu1 %v5406_v0  ;;  %v5433_v0 = vld [vmem:[#allocation9 + $0xd0] sm:$0xff]  }
 0x2a6   :  { %3681 = vmatpush2.bf16.msra.mxu1 %v5404_v46  ;;  %v5434_v46 = vld [vmem:[#allocation9 + $0x90] sm:$0xff]  }
 0x2a7   :  { %4622 = vmatprep.subr.bf16.mxu1 %v5407_v47  ;;  %v5435_v47 = vld [vmem:[#allocation9 + $0xc8] sm:$0xff]  }
 0x2a9   :  { %3683 = vmatmul.mubr.bf16.vlgmr.msra.gmra.mxu1 %v5751_v32  ;;  %v5419_v32 = vld [vmem:[#allocation9 + $0x48] sm:$0xff]  }
 0x2aa   :  { %4623 = vmatpush3.bf16.msra.mxu1 %v5408_v48  ;;  %v5436_v48 = vld [vmem:[#allocation9 + $0x88] sm:$0xff]  }
 0x2ab   :  { %4624 = vmatprep.subr.bf16.mxu1 %v5409_v49  ;;  %v3555_v4 = vpop.f32.mrf.mxu0  ;;  %v5437_v49 = vld [vmem:[#allocation9 + $0xc0] sm:$0xff]  }
 0x2ac   :  { %v3556_v23 = vadd.f32 %v3555_v4, %v3513_v21 }
 0x2ad   :  { %v3557_v8 = vpop.f32.mrf.mxu0 }
 0x2ae   :  { %4625 = vmatpush3.bf16.msra.mxu1 %v5410_v50  ;;  %v3558_v51 = vadd.f32 %v3557_v8, %v3515_v18  ;;  %v5438_v50 = vld [vmem:[#allocation9 + $0x80] sm:$0xff]  }
 0x2af   :  { %4626 = vmatprep.subr.bf16.mxu1 %v5411_v15  ;;  %v3559_v16 = vpop.f32.mrf.mxu0 }
 0x2b0   :  { %v3560_v3 = vadd.f32 %v3559_v16, %v3517_v19 }
 0x2b1   :  { %v3561_v1 = vpop.f32.mrf.mxu0 }
 0x2b2   :  { %4627 = vmatpush3.bf16.msra.mxu1 %v5412_v52  ;;  %v3562_v24 = vadd.f32 %v3561_v1, %v3519_v22 }
 0x2b3   :  { %4628 = vmatprep.subr.bf16.mxu1 %v5413_v53 }
 0x2b6   :  { %4629 = vmatpush3.bf16.msra.mxu1 %v5414_v54 }
 0x2b7   :  { %4630 = vmatprep.subr.bf16.mxu1 %v5415_v55 }
 0x2ba   :  { %4631 = vmatpush3.bf16.msra.mxu1 %v5416_v56  ;;  %v2513_v56 = vrot.slane %v5763_v10, %v413_v39 }
 0x2bb   :  { %4632 = vmatprep.subr.bf16.mxu1 %v5417_v57  ;;  %v2509_v57 = vrot.slane %v5763_v10, %v409_v40 }
 0x2be   :  { %4633 = vmatpush3.bf16.msra.mxu1 %v5418_v58 }
 0x2bf   :  { %4634 = vmatprep.subr.bf16.mxu1 %v5419_v32 }
 0x2c2   :  { %4635 = vmatpush3.bf16.msra.mxu1 %v5420_v59 }
 0x2c3   :  { %4636 = vmatprep.subr.bf16.mxu1 %v5421_v60 }
 0x2c6   :  { %4637 = vmatpush3.bf16.msra.mxu1 %v5422_v61 }
 0x2c7   :  { %4644 = vmatprep.subr.bf16.mxu1 %v5423_v62 }
 0x2eb   :  { %v3641_v15 = vpop.f32.mrf.mxu0 }
 0x2ec   :  { %v3642_v60 = vadd.f32 %v3641_v15, %v2509_v57 }
 0x2ed   :  { %v3643_v52 = vpop.f32.mrf.mxu0 }
 0x2ee   :  { %v3644_v59 = vadd.f32 %v3643_v52, %v2513_v56 }
 0x2ef   :  { %v3645_v53 = vpop.f32.mrf.mxu0 }
 0x2f0   :  { %v3646_v62 = vadd.f32 %v3645_v53, %v2509_v57 }
 0x2f1   :  { %v3647_v54 = vpop.f32.mrf.mxu0 }
 0x2f2   :  { %v3648_v8 = vadd.f32 %v3647_v54, %v2513_v56 }
 0x329   :  { %v3598_v17 = vpop.f32.mrf.mxu1 }
 0x32a   :  { %v3599_v25 = vadd.f32 %v3598_v17, %v3556_v23 }
 0x32b   :  { %v3600_v6 = vpop.f32.mrf.mxu1  ;;  %v3727_v55 = vpop.f32.mrf.mxu0 }
 0x32c   :  { %v3601_v30 = vadd.f32 %v3600_v6, %v3558_v51  ;;  %v3736_v31 = vmax.f32 %v3599_v25, 0.0 }
 0x32d   :  { %v3602_v9 = vpop.f32.mrf.mxu1  ;;  %v3729_v58 = vpop.f32.mrf.mxu0 }
 0x32e   :  { %v3603_v13 = vadd.f32 %v3602_v9, %v3560_v3  ;;  %v3737_v28 = vmax.f32 %v3601_v30, 0.0 }
 0x32f   :  { %v3604_v26 = vpop.f32.mrf.mxu1  ;;  %v3731_v2 = vpop.f32.mrf.mxu0 }
 0x330   :  { %v3605_v27 = vadd.f32 %v3604_v26, %v3562_v24  ;;  %v3740_v20 = vmax.f32 %v3603_v13, 0.0  ;;  %v4589_v24 = vld [vmem:[#allocation10] ss:$0 sm:$0xff] }
 0x331   :  { %v3733_v17 = vpop.f32.mrf.mxu0 }
 0x332   :  { %v3741_v29 = vmax.f32 %v3605_v27, 0.0  ;;  %v3744_v35 = vpack.c.bf16 %v3740_v20, %v3736_v31 }
 0x334   :  { %v3745_v33 = vpack.c.bf16 %v3741_v29, %v3737_v28 }
 0x336   :  { %4043 = vmatprep.mubr.bf16.mxu1 %v3745_v33 }
 0x337   :  { %4044 = vmatmul.mubr.bf16.vlgmr.msra.gmra.mxu1 %v3744_v35 }
 0x338   :  { %4645 = vmatpush3.bf16.msra.mxu1 %v5424_v34 }
 0x339   :  { %4646 = vmatprep.subr.bf16.mxu1 %v5425_v36 }
 0x33c   :  { %4647 = vmatpush3.bf16.msra.mxu1 %v5426_v37 }
 0x33d   :  { %4648 = vmatprep.subr.bf16.mxu1 %v5427_v38 }
 0x340   :  { %4649 = vmatpush3.bf16.msra.mxu1 %v5428_v41 }
 0x341   :  { %4650 = vmatprep.subr.bf16.mxu1 %v5429_v42 }
 0x344   :  { %4651 = vmatpush3.bf16.msra.mxu1 %v5430_v43 }
 0x345   :  { %4652 = vmatprep.subr.bf16.mxu1 %v5431_v44 }
 0x348   :  { %4653 = vmatpush3.bf16.msra.mxu1 %v5432_v45 }
 0x349   :  { %4654 = vmatprep.subr.bf16.mxu1 %v5433_v0 }
 0x34c   :  { %4655 = vmatpush3.bf16.msra.mxu1 %v5434_v46 }
 0x34d   :  { %4656 = vmatprep.subr.bf16.mxu1 %v5435_v47 }
 0x350   :  { %4657 = vmatpush3.bf16.msra.mxu1 %v5436_v48 }
 0x351   :  { %4658 = vmatprep.subr.bf16.mxu1 %v5437_v49 }
 0x354   :  { %4659 = vmatpush3.bf16.msra.mxu1 %v5438_v50 }
 0x369   :  { %v3684_v32 = vpop.f32.mrf.mxu1 }
 0x36a   :  { %v3685_v4 = vadd.f32 %v3684_v32, %v3642_v60 }
 0x36b   :  { %v3686_v61 = vpop.f32.mrf.mxu1 }
 0x36c   :  { %v3687_v63 = vadd.f32 %v3686_v61, %v3644_v59  ;;  %v3728_v5 = vadd.f32 %v3727_v55, %v3685_v4 }
 0x36d   :  { %v3688_v7 = vpop.f32.mrf.mxu1 }
 0x36e   :  { %v3689_v11 = vadd.f32 %v3688_v7, %v3646_v62  ;;  %v3730_v14 = vadd.f32 %v3729_v58, %v3687_v63  ;;  %v3738_v21 = vmax.f32 %v3728_v5, 0.0 }
 0x36f   :  { %v3690_v12 = vpop.f32.mrf.mxu1 }
 0x370   :  { %v3732_v16 = vadd.f32 %v3731_v2, %v3689_v11  ;;  %v3691_v39 = vadd.f32 %v3690_v12, %v3648_v8  ;;  %v3739_v10 = vmax.f32 %v3730_v14, 0.0 }
 0x372   :  { %v3734_v18 = vadd.f32 %v3733_v17, %v3691_v39  ;;  %v3742_v40 = vmax.f32 %v3732_v16, 0.0 }
 0x374   :  { %v3743_v19 = vmax.f32 %v3734_v18, 0.0  ;;  %v3746_v6 = vpack.c.bf16 %v3742_v40, %v3738_v21 }
 0x376   :  { %v3747_v1 = vpack.c.bf16 %v3743_v19, %v3739_v10 }
 0x378   :  { %4084 = vmatprep.mubr.bf16.mxu1 %v3747_v1 }
 0x379   :  { %4085 = vmatmul.mubr.bf16.vlgmr.msra.gmra.mxu1 %v3746_v6 }
 0x3f7   :  { %v4638_v22 = vpop.f32.mrf.mxu1 }
 0x3f9   :  { %v4639_v51 = vpop.f32.mrf.mxu1 }
 0x3fa   :  { %v4640_v9 = vadd.f32 %v4639_v51, %v4638_v22 }
 0x3fb   :  { %v4641_v3 = vpop.f32.mrf.mxu1 }
 0x3fc   :  { %v4046_v25 = vadd.f32 %v4640_v9, %v4589_v24 }
 0x3fd   :  { %v4642_v23 = vpop.f32.mrf.mxu1 }
 0x3fe   :  { %v4643_v26 = vadd.f32 %v4642_v23, %v4641_v3 }
 0x400   :  { %v4049_v31 = vadd.f32 %v4643_v26, %v4589_v24 }
 0x439   :  { %v4660_v30 = vpop.f32.mrf.mxu1 }
 0x43b   :  { %v4661_v13 = vpop.f32.mrf.mxu1 }
 0x43c   :  { %v4662_v27 = vadd.f32 %v4661_v13, %v4660_v30 }
 0x43d   :  { %v4663_v20 = vpop.f32.mrf.mxu1 }
 0x43e   :  { %v4087_v28 = vadd.f32 %v4662_v27, %v4046_v25 }
 0x43f   :  { %v4664_v29 = vpop.f32.mrf.mxu1 }
 0x440   :  { %4093 = vst [vmem:[%s5790_s7] sm:$0xff] %v4087_v28  ;;  %v4665_v33 = vadd.f32 %v4664_v29, %v4663_v20 }
 0x442   :  { %v4090_v34 = vadd.f32 %v4665_v33, %v4049_v31 }
 0x444   :  { %4094 = vst [vmem:[%s5790_s7 + $0x8] sm:$0xff] %v4090_v34 }
 0x445   :  { %4099 = vsyncpa [#allocation3], 1 }
 0x446   :  { %4100 = vsyncpa [#allocation5], 1 }
 0x447   :  { %4101 = vsyncpa [#allocation8], 1 }
 0x448   :  { %4102 = vsyncpa [#allocation11], 1 }

</bundles_post_ra>
